<compile_context>
chip_gen: v5e
topology: v5e:2x2
jax: 0.10.0
libtpu: 0.0.40
codegen_flags: <defaults>
</compile_context>

<pallas_src>
import functools

import jax
import jax.numpy as jnp
from jax.experimental import pallas as pl
from jax.experimental.pallas import tpu as pltpu

IN_DIM = 1        # matches input_dim=1
HIDDEN = 16       # matches hidden_dim=16
OUT_DIM = 1

_SQRT_HALF = 0.7071067811865476


def _gelu_exact(v):
    # torch.nn.GELU() default: 0.5 * v * (1 + erf(v / sqrt(2)))
    return 0.5 * v * (1.0 + jax.lax.erf(v * jnp.float32(_SQRT_HALF)))


def _mlp_kernel(x_ref, w1_ref, b1_ref, w2t_ref, b2_ref, w3_ref, b3_ref, o_ref):
    # x_ref / o_ref: (1, 1, block_m) token slabs (tokens on lanes).
    # Params (hidden on sublanes): w1 (16,1), b1 (16,1), w2t (16,16)=(out,in),
    # b2 (16,1), w3 (16,1), b3 (1,1).
    x = x_ref[0].astype(jnp.float32)                              # (1, bm)

    # fc1 (in_dim == 1): broadcast FMA, hidden on sublanes, then exact GELU.
    h1 = _gelu_exact(w1_ref[...] * x + b1_ref[...])               # (16, bm)

    # dropout(0.2): identity in eval mode (see TODO in header).

    # fc2: (16,16) @ (16,bm) on the MXU, f32 accumulate, then exact GELU.
    h2 = jnp.dot(w2t_ref[...], h1, preferred_element_type=jnp.float32) + b2_ref[...]
    h2 = _gelu_exact(h2)                                          # (16, bm)

    # fc3 (out_dim == 1): 16-row sublane reduce -> lane-dense (1, bm) output.
    y = jnp.sum(h2 * w3_ref[...], axis=0, keepdims=True) + b3_ref[...]

    o_ref[0] = y.astype(o_ref.dtype)


@functools.partial(jax.jit, static_argnames=("block_m",))
def _mlp_pallas(x3d, w1k, b1k, w2k, b2k, w3k, b3k, *, block_m):
    nblk = x3d.shape[0]

    def pspec(shape):
        return pl.BlockSpec(shape, lambda i: (0,) * len(shape))

    return pl.pallas_call(
        _mlp_kernel,
        out_shape=jax.ShapeDtypeStruct((nblk, 1, block_m), x3d.dtype),
        grid=(nblk,),
        in_specs=[
            pl.BlockSpec((1, 1, block_m), lambda i: (i, 0, 0)),   # x slab
            pspec((HIDDEN, IN_DIM)),                              # w1  (16, 1)
            pspec((HIDDEN, 1)),                                   # b1  (16, 1)
            pspec((HIDDEN, HIDDEN)),                              # w2^T (out, in)
            pspec((HIDDEN, 1)),                                   # b2  (16, 1)
            pspec((HIDDEN, OUT_DIM)),                             # w3  (16, 1)
            pspec((1, 1)),                                        # b3
        ],
        out_specs=pl.BlockSpec((1, 1, block_m), lambda i: (i, 0, 0)),
        compiler_params=pltpu.CompilerParams(
            dimension_semantics=("parallel",)),
    )(x3d, w1k, b1k, w2k, b2k, w3k, b3k)


def _round_up(a, b):
    return (a + b - 1) // b * b


def sentiment_mlp(x, params, *, block_m=2048):
    """x: (..., IN_DIM).  Returns (..., OUT_DIM).  Inference-mode forward."""
    assert x.shape[-1] == IN_DIM
    lead = x.shape[:-1]
    xf = x.reshape(-1)                         # IN_DIM == 1 -> flatten tokens
    n = xf.shape[0]

    # Tokens go on the 128-wide lane axis: block size is a multiple of 128.
    bm = max(128, min(_round_up(block_m, 128), _round_up(n, 128)))
    # Keep >=2 grid steps when the batch allows it (v7x has 2 TensorCores).
    if _round_up(n, 128) >= 256:
        bm = min(bm, _round_up((n + 1) // 2, 128))

    n_pad = _round_up(n, bm)
    if n_pad != n:
        xf = jnp.pad(xf, (0, n_pad - n))
    x3d = xf.reshape(n_pad // bm, 1, bm)

    # Re-layout params for the flipped (hidden-on-sublanes) kernel.
    w1, b1, w2, b2, w3, b3 = params
    w1k = w1.reshape(IN_DIM, HIDDEN).T         # (16, 1)
    b1k = b1.reshape(1, HIDDEN).T              # (16, 1)
    w2k = w2.T                                 # (out, in) = (16, 16)
    b2k = b2.reshape(1, HIDDEN).T              # (16, 1)
    w3k = w3.reshape(HIDDEN, OUT_DIM)          # (16, 1)
    b3k = b3.reshape(1, 1)

    out = _mlp_pallas(x3d, w1k, b1k, w2k, b2k, w3k, b3k, block_m=bm)
    return out.reshape(-1)[:n].reshape(lead + (OUT_DIM,))


def init_params(key):
    """Mirror PyTorch nn.Linear defaults: U(-1/sqrt(fan_in), +1/sqrt(fan_in))."""
    k1, k2, k3, k4, k5, k6 = jax.random.split(key, 6)
    f32 = jnp.float32
    bnd1 = 1.0 / jnp.sqrt(jnp.float32(IN_DIM))
    bnd2 = 1.0 / jnp.sqrt(jnp.float32(HIDDEN))
    w1 = jax.random.uniform(k1, (IN_DIM, HIDDEN), f32, -bnd1, bnd1)
    b1 = jax.random.uniform(k2, (1, HIDDEN), f32, -bnd1, bnd1)
    w2 = jax.random.uniform(k3, (HIDDEN, HIDDEN), f32, -bnd2, bnd2)
    b2 = jax.random.uniform(k4, (1, HIDDEN), f32, -bnd2, bnd2)
    w3 = jax.random.uniform(k5, (HIDDEN, OUT_DIM), f32, -bnd2, bnd2)
    b3 = jax.random.uniform(k6, (1, OUT_DIM), f32, -bnd2, bnd2)
    return w1, b1, w2, b2, w3, b3


def reference(x, params):
    """Pure-JAX reference of SentimentMLP.forward (eval mode, exact GELU)."""
    w1, b1, w2, b2, w3, b3 = params
    h = jax.nn.gelu(x @ w1 + b1, approximate=False)
    h = jax.nn.gelu(h @ w2 + b2, approximate=False)     # dropout is identity in eval
    return h @ w3 + b3


if __name__ == "__main__":
    key = jax.random.PRNGKey(0)
    kx, kp = jax.random.split(key)

    batch = 2000                                   # not a multiple of block_m on purpose
    x = jax.random.normal(kx, (batch, IN_DIM), jnp.float32)
    params = init_params(kp)

    out = sentiment_mlp(x, params, block_m=2048)   # -> bm=1024, grid=(2,)
    jax.block_until_ready(out)

    ref = reference(x.reshape(-1, IN_DIM), params).reshape(batch, OUT_DIM)
    assert out.shape == (batch, OUT_DIM)
    assert jnp.allclose(out, ref, atol=2e-5, rtol=1e-4), "mismatch vs reference"

    print("KERNEL_OK")
</pallas_src>

<mosaic_0001>
module attributes {stable_mosaic.version = 11 : i64} {
  func.func @_mlp_kernel(%arg0: i32, %arg1: memref<1x1x1024xf32, #tpu.memory_space<vmem>>, %arg2: memref<16x1xf32, #tpu.memory_space<vmem>>, %arg3: memref<16x1xf32, #tpu.memory_space<vmem>>, %arg4: memref<16x16xf32, #tpu.memory_space<vmem>>, %arg5: memref<16x1xf32, #tpu.memory_space<vmem>>, %arg6: memref<16x1xf32, #tpu.memory_space<vmem>>, %arg7: memref<1x1xf32, #tpu.memory_space<vmem>>, %arg8: memref<1x1x1024xf32, #tpu.memory_space<vmem>>) attributes {dimension_semantics = [#tpu.dimension_semantics<parallel>], iteration_bounds = array<i64: 2>, scalar_prefetch = 0 : i64, scratch_operands = 0 : i64, tpu.core_type = #tpu.core_type<tc>, window_params = [{transform_indices = @transform_0, window_bounds = array<i64: 1, 1, 1024>}, {pipeline_mode = #tpu.pipeline_mode<synchronous>, transform_indices = @transform_1, window_bounds = array<i64: 16, 1>}, {pipeline_mode = #tpu.pipeline_mode<synchronous>, transform_indices = @transform_2, window_bounds = array<i64: 16, 1>}, {pipeline_mode = #tpu.pipeline_mode<synchronous>, transform_indices = @transform_3, window_bounds = array<i64: 16, 16>}, {pipeline_mode = #tpu.pipeline_mode<synchronous>, transform_indices = @transform_4, window_bounds = array<i64: 16, 1>}, {pipeline_mode = #tpu.pipeline_mode<synchronous>, transform_indices = @transform_5, window_bounds = array<i64: 16, 1>}, {pipeline_mode = #tpu.pipeline_mode<synchronous>, transform_indices = @transform_6, window_bounds = array<i64: 1, 1>}, {transform_indices = @transform_7, window_bounds = array<i64: 1, 1, 1024>}]} {
    %c0 = arith.constant 0 : index
    %c0_0 = arith.constant 0 : index
    %c0_1 = arith.constant 0 : index
    %0 = vector.load %arg1[%c0, %c0_0, %c0_1] : memref<1x1x1024xf32, #tpu.memory_space<vmem>>, vector<1x1x1024xf32>
    %1 = vector.shape_cast %0 : vector<1x1x1024xf32> to vector<1x1024xf32>
    %c0_2 = arith.constant 0 : index
    %c0_3 = arith.constant 0 : index
    %2 = vector.load %arg2[%c0_2, %c0_3] : memref<16x1xf32, #tpu.memory_space<vmem>>, vector<16x1xf32>
    %3 = vector.broadcast %2 : vector<16x1xf32> to vector<16x1024xf32>
    %4 = vector.broadcast %1 : vector<1x1024xf32> to vector<16x1024xf32>
    %5 = arith.mulf %3, %4 : vector<16x1024xf32>
    %c0_4 = arith.constant 0 : index
    %c0_5 = arith.constant 0 : index
    %6 = vector.load %arg3[%c0_4, %c0_5] : memref<16x1xf32, #tpu.memory_space<vmem>>, vector<16x1xf32>
    %7 = vector.broadcast %6 : vector<16x1xf32> to vector<16x1024xf32>
    %8 = arith.addf %5, %7 : vector<16x1024xf32>
    %cst = arith.constant 5.000000e-01 : f32
    %9 = vector.broadcast %cst : f32 to vector<16x1024xf32>
    %10 = arith.mulf %9, %8 : vector<16x1024xf32>
    %cst_6 = arith.constant 0.707106769 : f32
    %11 = vector.broadcast %cst_6 : f32 to vector<16x1024xf32>
    %12 = arith.mulf %8, %11 : vector<16x1024xf32>
    %13 = math.erf %12 : vector<16x1024xf32>
    %cst_7 = arith.constant 1.000000e+00 : f32
    %14 = vector.broadcast %cst_7 : f32 to vector<16x1024xf32>
    %15 = arith.addf %14, %13 : vector<16x1024xf32>
    %16 = arith.mulf %10, %15 : vector<16x1024xf32>
    %c0_8 = arith.constant 0 : index
    %c0_9 = arith.constant 0 : index
    %17 = vector.load %arg4[%c0_8, %c0_9] : memref<16x16xf32, #tpu.memory_space<vmem>>, vector<16x16xf32>
    %cst_10 = arith.constant dense<0.000000e+00> : vector<16x1024xf32>
    %18 = tpu.matmul %17, %16, %cst_10 {dimension_numbers = #tpu.dot_dimension_numbers<[1], [0], [0], [1], [0, 0, 1, 1], [], []>} : vector<16x16xf32>, vector<16x1024xf32>, vector<16x1024xf32> -> vector<16x1024xf32>
    %c0_11 = arith.constant 0 : index
    %c0_12 = arith.constant 0 : index
    %19 = vector.load %arg5[%c0_11, %c0_12] : memref<16x1xf32, #tpu.memory_space<vmem>>, vector<16x1xf32>
    %20 = vector.broadcast %19 : vector<16x1xf32> to vector<16x1024xf32>
    %21 = arith.addf %18, %20 : vector<16x1024xf32>
    %cst_13 = arith.constant 5.000000e-01 : f32
    %22 = vector.broadcast %cst_13 : f32 to vector<16x1024xf32>
    %23 = arith.mulf %22, %21 : vector<16x1024xf32>
    %cst_14 = arith.constant 0.707106769 : f32
    %24 = vector.broadcast %cst_14 : f32 to vector<16x1024xf32>
    %25 = arith.mulf %21, %24 : vector<16x1024xf32>
    %26 = math.erf %25 : vector<16x1024xf32>
    %cst_15 = arith.constant 1.000000e+00 : f32
    %27 = vector.broadcast %cst_15 : f32 to vector<16x1024xf32>
    %28 = arith.addf %27, %26 : vector<16x1024xf32>
    %29 = arith.mulf %23, %28 : vector<16x1024xf32>
    %c0_16 = arith.constant 0 : index
    %c0_17 = arith.constant 0 : index
    %30 = vector.load %arg6[%c0_16, %c0_17] : memref<16x1xf32, #tpu.memory_space<vmem>>, vector<16x1xf32>
    %31 = vector.broadcast %30 : vector<16x1xf32> to vector<16x1024xf32>
    %32 = arith.mulf %29, %31 : vector<16x1024xf32>
    %cst_18 = arith.constant dense<0.000000e+00> : vector<1024xf32>
    %33 = vector.multi_reduction <add>, %32, %cst_18 [0] : vector<16x1024xf32> to vector<1024xf32>
    %34 = vector.shape_cast %33 : vector<1024xf32> to vector<1x1024xf32>
    %c0_19 = arith.constant 0 : index
    %c0_20 = arith.constant 0 : index
    %35 = vector.load %arg7[%c0_19, %c0_20] : memref<1x1xf32, #tpu.memory_space<vmem>>, vector<1x1xf32>
    %36 = vector.broadcast %35 : vector<1x1xf32> to vector<1x1024xf32>
    %37 = arith.addf %34, %36 : vector<1x1024xf32>
    %c0_21 = arith.constant 0 : index
    %c0_22 = arith.constant 0 : index
    %c0_23 = arith.constant 0 : index
    %38 = vector.load %arg8[%c0_21, %c0_22, %c0_23] : memref<1x1x1024xf32, #tpu.memory_space<vmem>>, vector<1x1x1024xf32>
    %39 = vector.shape_cast %38 : vector<1x1x1024xf32> to vector<1x1024xf32>
    %40 = vector.shape_cast %37 : vector<1x1024xf32> to vector<1x1x1024xf32>
    tpu.vector_store %arg8[%c0_21, %c0_22, %c0_23], %40 {strides = array<i32>} : memref<1x1x1024xf32, #tpu.memory_space<vmem>>, vector<1x1x1024xf32>,
    return
  }
  func.func @transform_0(%arg0: i32) -> (i32, i32, i32) {
    %c0_i32 = arith.constant 0 : i32
    %c0_i32_0 = arith.constant 0 : i32
    %c0_i32_1 = arith.constant 0 : i32
    return %arg0, %c0_i32, %c0_i32_0 : i32, i32, i32
  }
  func.func @transform_1(%arg0: i32) -> (i32, i32) {
    %c0_i32 = arith.constant 0 : i32
    %c0_i32_0 = arith.constant 0 : i32
    %c0_i32_1 = arith.constant 0 : i32
    return %c0_i32, %c0_i32_0 : i32, i32
  }
  func.func @transform_2(%arg0: i32) -> (i32, i32) {
    %c0_i32 = arith.constant 0 : i32
    %c0_i32_0 = arith.constant 0 : i32
    %c0_i32_1 = arith.constant 0 : i32
    return %c0_i32, %c0_i32_0 : i32, i32
  }
  func.func @transform_3(%arg0: i32) -> (i32, i32) {
    %c0_i32 = arith.constant 0 : i32
    %c0_i32_0 = arith.constant 0 : i32
    %c0_i32_1 = arith.constant 0 : i32
    return %c0_i32, %c0_i32_0 : i32, i32
  }
  func.func @transform_4(%arg0: i32) -> (i32, i32) {
    %c0_i32 = arith.constant 0 : i32
    %c0_i32_0 = arith.constant 0 : i32
    %c0_i32_1 = arith.constant 0 : i32
    return %c0_i32, %c0_i32_0 : i32, i32
  }
  func.func @transform_5(%arg0: i32) -> (i32, i32) {
    %c0_i32 = arith.constant 0 : i32
    %c0_i32_0 = arith.constant 0 : i32
    %c0_i32_1 = arith.constant 0 : i32
    return %c0_i32, %c0_i32_0 : i32, i32
  }
  func.func @transform_6(%arg0: i32) -> (i32, i32) {
    %c0_i32 = arith.constant 0 : i32
    %c0_i32_0 = arith.constant 0 : i32
    %c0_i32_1 = arith.constant 0 : i32
    return %c0_i32, %c0_i32_0 : i32, i32
  }
  func.func @transform_7(%arg0: i32) -> (i32, i32, i32) {
    %c0_i32 = arith.constant 0 : i32
    %c0_i32_0 = arith.constant 0 : i32
    %c0_i32_1 = arith.constant 0 : i32
    return %arg0, %c0_i32, %c0_i32_0 : i32, i32, i32
  }
}

</mosaic_0001>

<bundles_post_ra>
// kernel: _mlp_pallas.1
= control target key start
LH: loop header
LB: loop body
LE: loop exit
PB: predicated region body
PF: predicated region fallthrough
CT: control target
= control target key end

     0   :  { %s4012_s0 = inlined_call_operand.vmem [shape: f32[2,1,1024], index: 0, kind: input, shape index: {}]   ;;  %s4013_s1 = inlined_call_operand.vmem [shape: f32[16,1], index: 1, kind: input, shape index: {}]   ;;  %s4014_s2 = inlined_call_operand.vmem [shape: f32[16,1], index: 2, kind: input, shape index: {}]   ;;  %s4015_s3 = inlined_call_operand.vmem [shape: f32[16,16], index: 3, kind: input, shape index: {}]   ;;  %s4016_s4 = inlined_call_operand.vmem [shape: f32[16,1], index: 4, kind: input, shape index: {}]   ;;  %s4017_s5 = inlined_call_operand.vmem [shape: f32[16,1], index: 5, kind: input, shape index: {}]   ;;  %s4018_s6 = inlined_call_operand.<no memory space> [shape: f32[1,1], index: 6, kind: input, shape index: {}]   ;;  %s4019_s7 = inlined_call_operand.hbm [shape: f32[2,1,1024], index: 7, kind: output, shape index: {}]  }
   0x1   :  { %v12_v0 = vstv %s4018_s6 }
   0x2   :  { %13 = vst [vmem:[#allocation2] sm:$0x1] %v12_v0 }
   0x3   :  { %14 = vsyncpa [#allocation4], 0 }
   0x4   :  { %16 = vsyncpa [#allocation4 + $0x1], 0  ;;  %s2441_s26 = smov 0   ;;  %s2443_s27 = smov 0  }
   0x5   :  { %s2445_s28 = smov 0   ;;  %s2447_s29 = smov 0  }
   0x6 LB: > { %s2462_s6 = sadd.s32 4294967295, %s2395_s29   ;;  %s2168_s30 = sadd.s32 4294967294, %s2395_s29   ;;  %s2395_s29 = sphi %s2447_s29, %s4081_s29   ;;  %s2391_s28 = sphi %s2445_s28, %s4080_s28   ;;  %s2387_s27 = sphi %s2443_s27, %s4079_s27   ;;  %s2383_s26 = sphi %s2441_s26, %s4078_s26  }
   0x7   : > { %s2466_s8 = sadd.s32 1, %s2395_s29   ;;  %s181_s9 = sadd.s32 1, %s2391_s28 }
   0x8   : > { %s178_s10 = ssub.s32 %s2395_s29, %s2466_s8  ;;  %p191_p0 = scmp.ne.s32.totalorder %s2391_s28, %s2387_s27 }
   0x9   : > { %p179_p1 = scmp.eq.s32.totalorder %s178_s10, 0  ;;  %p192_p2 = scmp.eq.s32.totalorder %s2462_s6, 1 }
   0xa   : > { %p197_p3 = scmp.ne.s32.totalorder %s2387_s27, %s2383_s26  ;;  %p198_p4 = scmp.eq.s32.totalorder %s2168_s30, 1 }
   0xb   : > { %s2477_s11 = scalar_select %p179_p1, %s2391_s28, %s181_s9  }
   0xc   : > { %p2479_p5 = por %p192_p2, %p191_p0  ;;  %p2483_p6 = por %p198_p4, %p197_p3 }
   0xd   : > { %p2171_p7 = scmp.ge.s32.totalorder %s2395_s29, 1  ;;  %p241_p8 = scmp.lt.s32.totalorder %s2395_s29, 3 }
   0xf   : > { %p242_p9 = pnand %p2171_p7, %p241_p8 }
  0x10   : > { %p272_p10 = scmp.lt.s32.totalorder (!%p242_p9), %s2462_s6, 1  ;;  %s269_s24 = sand.u32 (!%p242_p9), 1, %s2387_s27  }
  0x11   : > { %245 = sbr.rel (%p242_p9) target bundleno = 622 (0x26e), region = 48  ;;  %s3976_s25 = sshll.u32 (!%p242_p9), %s269_s24, 3 }
  0x12   : > { %s2094_s17 = scalar_lea.sflag (!%p242_p9), [#allocation4], %s269_s24  ;;  %s2353_s22 = scalar_lea.hbm (!%p242_p9), %s4019_s7, 16 }
  0x16   : > { %v323_v1 = vld [vmem:[%s4014_s2 + $0x8] sm:$0xff]  ;;  %v2397_v3 = vmov 0   ;;  %v322_v4 = vld [vmem:[%s4014_s2] sm:$0xff]  ;;  %s273_s30 = scalar_select %p272_p10, %s2462_s6, 1 }
  0x17   : > { %v278_v2 = vld [vmem:[%s4013_s1 + $0x8] sm:$0xff]  ;;  %2267 = vset.pattern.permute.xlu1 %v2397_v3  ;;  %2266 = vset.pattern.permute.xlu0 %v2397_v3  ;;  %v277_v5 = vld [vmem:[%s4013_s1] sm:$0xff] }
  0x18   : > { %331 = vperm.xlu1 %2267, %v323_v1   ;;  %286 = vperm.xlu0 %2266, %v278_v2   ;;  %v1964_v6 = vld [vmem:[%s4017_s5 + $0x8] sm:$0xff]  ;;  %v1963_v7 = vld [vmem:[%s4017_s5] sm:$0xff]  ;;  %s2173_s9 = sshll.u32 %s273_s30, 3  ;;  %s2223_s30 = sshll.u32 %s2462_s6, 3 }
  0x19   : > { %2268 = vset.pattern.permute.xlu2 %v2397_v3  ;;  %s275_s15 = scalar_lea.vmem %s4012_s0, %s2173_s9  ;;  %s2104_s14 = scalar_lea.hbm %s4019_s7, %s2223_s30 }
  0x1a   : > { %v2512_v8 = vld [vmem:[%s275_s15] sm:$0xff]  ;;  %s271_s6 = scalar_lea.vmem [#allocation3], %s3976_s25  ;;  %s2108_s16 = sshll.u32 %s2104_s14, 4  ;;  %s2109_s16 = int_to_ptr.hbm [resolvable:$true] %s2108_s16 }
  0x1b   : > { %v290_v9 = vperm.slane %v2512_v8, 0  ;;  %v291_v10 = vperm.slane %v2512_v8, 1  ;;  %v292_v11 = vperm.slane %v2512_v8, 2  ;;  %v293_v12 = vperm.slane %v2512_v8, 3  ;;  %s2106_s15 = sshll.u32 %s271_s6, 4  ;;  %s2347_s18 = sshra.s32 %s2109_s16, 4  ;;  %s2107_s15 = int_to_ptr.vmem [resolvable:$true] %s2106_s15  ;;  %s2348_s18 = int_to_ptr.hbm [resolvable:$true] %s2347_s18 }
  0x1c   : > { %s2349_s19 = scalar_lea.hbm %s2348_s18, 8  ;;  %p2354_p0 = scmp.lt.s32.totalorder %s2348_s18, %s4019_s7 }
  0x1d   : > { %p2350_p11 = scmp.ne.s32.totalorder %s2348_s18, %s2349_s19  ;;  %p2355_p1 = scmp.lt.s32.totalorder %s2353_s22, %s2349_s19 }
  0x1f   : > { %p2351_p12 = pnand %p2350_p11, %p2479_p5  ;;  %p2356_p2 = por %p2355_p1, %p2354_p0 }
  0x20   : > { %326 = vperm.xlu1 %2267, %v322_v4   ;;  %281 = vperm.xlu0 %2266, %v277_v5  }
  0x21   : > { %p2352_p13 = pneg %p2351_p12 }
  0x23   : > { %p2357_p3 = pnand %p2356_p2, %p2352_p13 }
  0x28   : > { %1972 = vperm.xlu1 %2267, %v1964_v6   ;;  %1967 = vperm.xlu0 %2266, %v1963_v7  }
  0x8a   : > { %v2518_v13 = vpop.permute.xlu0 %286  ;;  %v2532_v18 = vpop.permute.xlu1 %331 }
  0x8b   : > { %v314_v14 = vmul.f32 %v290_v9, %v2518_v13  ;;  %v315_v15 = vmul.f32 %v291_v10, %v2518_v13  ;;  %v316_v16 = vmul.f32 %v292_v11, %v2518_v13  ;;  %v317_v17 = vmul.f32 %v293_v12, %v2518_v13 }
  0x8d   : > { %v2535_v19 = vadd.f32 %v2532_v18, %v314_v14  ;;  %v2538_v20 = vadd.f32 %v2532_v18, %v315_v15  ;;  %v2541_v21 = vadd.f32 %v2532_v18, %v316_v16  ;;  %v2544_v22 = vadd.f32 %v2532_v18, %v317_v17 }
  0x8f   : > { %v2547_v23 = vmul.f32 0.70710677, %v2535_v19  ;;  %v2550_v24 = vmul.f32 0.70710677, %v2538_v20  ;;  %v2553_v25 = vmul.f32 0.70710677, %v2541_v21 }
  0x90   : > { %v2556_v26 = vmul.f32 0.70710677, %v2544_v22 }
  0x91   : > { %v702_v27 = vmul.f32 %v2547_v23, %v2547_v23  ;;  %v742_v28 = vmul.f32 %v2550_v24, %v2550_v24  ;;  %v782_v29 = vmul.f32 %v2553_v25, %v2553_v25 }
  0x92   : > { %v822_v30 = vmul.f32 %v2556_v26, %v2556_v26 }
  0x93   : > { %v2566_v31 = vmin.f32 %v702_v27, 16.0  ;;  %v2568_v32 = vmin.f32 %v742_v28, 16.0  ;;  %v2570_v33 = vmin.f32 %v782_v29, 16.0 }
  0x94   : > { %v2572_v34 = vmin.f32 %v822_v30, 16.0 }
  0x95   : > { %v704_v35 = vmul.f32 2.1237322e-06, %v2566_v31  ;;  %v715_v36 = vmul.f32 3.8918573e-05, %v2566_v31  ;;  %v744_v37 = vmul.f32 2.1237322e-06, %v2568_v32 }
  0x96   : > { %v755_v38 = vmul.f32 3.8918573e-05, %v2568_v32  ;;  %v784_v39 = vmul.f32 2.1237322e-06, %v2570_v33  ;;  %v795_v40 = vmul.f32 3.8918573e-05, %v2570_v33 }
  0x97   : > { %v705_v41 = vadd.f32 0.00028619796, %v704_v35  ;;  %v716_v42 = vadd.f32 0.001143296, %v715_v36  ;;  %v745_v43 = vadd.f32 0.00028619796, %v744_v37  ;;  %v2599_v36 = vpop.permute.xlu0 %281 }
  0x98   : > { %v756_v44 = vadd.f32 0.001143296, %v755_v38  ;;  %v785_v45 = vadd.f32 0.00028619796, %v784_v39  ;;  %v796_v46 = vadd.f32 0.001143296, %v795_v40 }
  0x99   : > { %v706_v47 = vmul.f32 %v705_v41, %v2566_v31  ;;  %v717_v48 = vmul.f32 %v716_v42, %v2566_v31  ;;  %v746_v49 = vmul.f32 %v745_v43, %v2568_v32  ;;  %v824_v50 = vmul.f32 2.1237322e-06, %v2572_v34 }
  0x9a   : > { %v757_v51 = vmul.f32 %v756_v44, %v2568_v32  ;;  %v786_v52 = vmul.f32 %v785_v45, %v2570_v33  ;;  %v797_v53 = vmul.f32 %v796_v46, %v2570_v33  ;;  %v835_v54 = vmul.f32 3.8918573e-05, %v2572_v34 }
  0x9b   : > { %v707_v55 = vadd.f32 0.0036580483, %v706_v47  ;;  %v718_v56 = vadd.f32 0.014752088, %v717_v48  ;;  %v747_v57 = vadd.f32 0.0036580483, %v746_v49 }
  0x9c   : > { %v758_v58 = vadd.f32 0.014752088, %v757_v51  ;;  %v787_v59 = vadd.f32 0.0036580483, %v786_v52  ;;  %v798_v60 = vadd.f32 0.014752088, %v797_v53  ;;  %v306_v52 = vmul.f32 %v290_v9, %v2599_v36 }
  0x9d   : > { %v708_v61 = vmul.f32 %v707_v55, %v2566_v31  ;;  %v719_v62 = vmul.f32 %v718_v56, %v2566_v31  ;;  %v748_v63 = vmul.f32 %v747_v57, %v2568_v32  ;;  %v825_v0 = vadd.f32 0.00028619796, %v824_v50 }
  0x9e   : > { %v759_v1 = vmul.f32 %v758_v58, %v2568_v32  ;;  %v788_v2 = vmul.f32 %v787_v59, %v2570_v33  ;;  %v799_v3 = vmul.f32 %v798_v60, %v2570_v33  ;;  %v836_v4 = vadd.f32 0.001143296, %v835_v54 }
  0x9f   : > { %v709_v5 = vadd.f32 0.05243302, %v708_v61  ;;  %v720_v6 = vadd.f32 0.112945676, %v719_v62  ;;  %v749_v7 = vadd.f32 0.05243302, %v748_v63  ;;  %v826_v14 = vmul.f32 %v825_v0, %v2572_v34 }
  0xa0   : > { %v760_v15 = vadd.f32 0.112945676, %v759_v1  ;;  %v789_v16 = vadd.f32 0.05243302, %v788_v2  ;;  %v800_v17 = vadd.f32 0.112945676, %v799_v3  ;;  %v837_v27 = vmul.f32 %v836_v4, %v2572_v34 }
  0xa1   : > { %v710_v28 = vmul.f32 %v709_v5, %v2566_v31  ;;  %v721_v29 = vmul.f32 %v720_v6, %v2566_v31  ;;  %v750_v30 = vmul.f32 %v749_v7, %v2568_v32  ;;  %v827_v35 = vadd.f32 0.0036580483, %v826_v14 }
  0xa2   : > { %v761_v37 = vmul.f32 %v760_v15, %v2568_v32  ;;  %v790_v38 = vmul.f32 %v789_v16, %v2570_v33  ;;  %v801_v39 = vmul.f32 %v800_v17, %v2570_v33  ;;  %v838_v40 = vadd.f32 0.014752088, %v837_v27 }
  0xa3   : > { %v711_v41 = vadd.f32 0.18741608, %v710_v28  ;;  %v722_v42 = vadd.f32 0.4994258, %v721_v29  ;;  %v751_v43 = vadd.f32 0.18741608, %v750_v30  ;;  %v828_v44 = vmul.f32 %v827_v35, %v2572_v34 }
  0xa4   : > { %v762_v45 = vadd.f32 0.4994258, %v761_v37  ;;  %v791_v46 = vadd.f32 0.18741608, %v790_v38  ;;  %v802_v47 = vadd.f32 0.4994258, %v801_v39  ;;  %v839_v48 = vmul.f32 %v838_v40, %v2572_v34 }
  0xa5   : > { %v712_v49 = vmul.f32 %v711_v41, %v2566_v31  ;;  %v723_v50 = vmul.f32 %v722_v42, %v2566_v31  ;;  %v829_v51 = vadd.f32 0.05243302, %v828_v44  ;;  %v752_v53 = vmul.f32 %v751_v43, %v2568_v32 }
  0xa6   : > { %v763_v54 = vmul.f32 %v762_v45, %v2568_v32  ;;  %v803_v55 = vmul.f32 %v802_v47, %v2570_v33  ;;  %v840_v56 = vadd.f32 0.112945676, %v839_v48  ;;  %v792_v58 = vmul.f32 %v791_v46, %v2570_v33  ;;  %v2627_v32 = vpop.permute.xlu1 %326 }
  0xa7   : > { %v2614_v57 = vadd.f32 1.0, %v723_v50  ;;  %v307_v31 = vmul.f32 %v291_v10, %v2599_v36  ;;  %v308_v59 = vmul.f32 %v292_v11, %v2599_v36  ;;  %v713_v9 = vadd.f32 1.1283791, %v712_v49 }
  0xa8   : > { %v2623_v60 = vadd.f32 1.0, %v763_v54  ;;  %v2625_v61 = vadd.f32 1.0, %v803_v55  ;;  %v2630_v62 = vmul.f32 0.5, %v2535_v19  ;;  %v2634_v33 = vmul.f32 0.5, %v2538_v20 }
  0xa9   : > { %2269 = vrcp.f32 %v2614_v57  ;;  %v830_v10 = vmul.f32 %v829_v51, %v2572_v34  ;;  %v753_v63 = vadd.f32 1.1283791, %v752_v53  ;;  %v841_v11 = vmul.f32 %v840_v56, %v2572_v34 }
  0xaa   : > { %2271 = vrcp.f32 %v2623_v60  ;;  %v2640_v0 = vadd.f32 %v2627_v32, %v306_v52  ;;  %v2643_v1 = vmul.f32 0.5, %v2541_v21  ;;  %v793_v19 = vadd.f32 1.1283791, %v792_v58 }
  0xab   : > { %v2646_v2 = vadd.f32 %v2627_v32, %v307_v31  ;;  %v2649_v20 = vadd.f32 %v2627_v32, %v308_v59  ;;  %v2652_v3 = vmul.f32 %v713_v9, %v2547_v23  ;;  %v734_v4 = vand.u32 2147483647, %v2614_v57 }
  0xac   : > { %v736_v5 = vand.u32 2147483648, %v2614_v57  ;;  %2273 = vrcp.f32 %v2625_v61  ;;  %v774_v6 = vand.u32 2147483647, %v2623_v60  ;;  %v776_v21 = vand.u32 2147483648, %v2623_v60 }
  0xad   : > { %v816_v7 = vand.u32 2147483648, %v2625_v61  ;;  %v831_v14 = vadd.f32 0.18741608, %v830_v10  ;;  %vm730_vm0 = vweird.f32 %v2614_v57  ;;  %v2662_v15 = vmul.f32 %v753_v63, %v2550_v24 }
  0xae   : > { %v842_v23 = vadd.f32 0.4994258, %v841_v11  ;;  %v2665_v16 = vmul.f32 0.70710677, %v2640_v0  ;;  %vm770_vm1 = vweird.f32 %v2623_v60  ;;  %v2669_v27 = vmul.f32 %v793_v19, %v2553_v25 }
  0xaf   : > { %v2270_v17 = vpop.eup %2269  ;;  %v814_v28 = vand.u32 2147483647, %v2625_v61  ;;  %v832_v29 = vmul.f32 %v831_v14, %v2572_v34  ;;  %v2674_v30 = vmul.f32 0.70710677, %v2646_v2  ;;  %vm2677_vm2 = vcmp.eq.f32.partialorder %v734_v4, 8.507059e+37 }
  0xb0   : > { %v2272_v35 = vpop.eup %2271  ;;  %v726_v24 = vmul.f32 %v2270_v17, %v2614_v57  ;;  %v737_v38 = vor.u32 1.1754944e-38, %v736_v5  ;;  %v843_v39 = vmul.f32 %v842_v23, %v2572_v34  ;;  %v382_v25 = vmul.f32 %v2665_v16, %v2665_v16 }
  0xb1   : > { %v766_v40 = vmul.f32 %v2272_v35, %v2623_v60  ;;  %vm2685_vm3 = vcmp.eq.f32.partialorder %v774_v6, 8.507059e+37  ;;  %v777_v42 = vor.u32 1.1754944e-38, %v776_v21  ;;  %vm810_vm4 = vweird.f32 %v2625_v61 }
  0xb2   : > { %v817_v43 = vor.u32 1.1754944e-38, %v816_v7  ;;  %v833_v44 = vadd.f32 1.1283791, %v832_v29  ;;  %v2274_v45 = vpop.eup %2273  ;;  %v727_v46 = vsub.f32 1.0, %v726_v24  ;;  %v2690_v47 = vadd.f32 1.0, %v843_v39 }
  0xb3   : > { %v2692_v48 = vmin.f32 %v382_v25, 16.0  ;;  %v422_v34 = vmul.f32 %v2674_v30, %v2674_v30  ;;  %vm731_vm5 = vweird.f32 %v2270_v17  ;;  %v767_v49 = vsub.f32 1.0, %v766_v40 }
  0xb4   : > { %vm771_vm6 = vweird.f32 %v2272_v35  ;;  %v806_v50 = vmul.f32 %v2274_v45, %v2625_v61  ;;  %vm2697_vm7 = vcmp.eq.f32.partialorder %v814_v28, 8.507059e+37  ;;  %v728_v52 = vmul.f32 %v2270_v17, %v727_v46  ;;  %vm732_vm9 = vmor %vm730_vm0, %vm731_vm5 }
  0xb5   : > { %vm811_vm8 = vweird.f32 %v2274_v45  ;;  %v2702_v53 = vmul.f32 %v833_v44, %v2556_v26  ;;  %2275 = vrcp.f32 %v2690_v47  ;;  %v768_v54 = vmul.f32 %v2272_v35, %v767_v49  ;;  %vm772_vm10 = vmor %vm770_vm1, %vm771_vm6 }
  0xb6   : > { %v807_v55 = vsub.f32 1.0, %v806_v50  ;;  %v856_v56 = vand.u32 2147483648, %v2690_v47  ;;  %v384_v58 = vmul.f32 2.1237322e-06, %v2692_v48  ;;  %v729_v31 = vadd.f32 %v2270_v17, %v728_v52  ;;  %vm812_vm12 = vmor %vm810_vm4, %vm811_vm8 }
  0xb7   : > { %v854_v59 = vand.u32 2147483647, %v2690_v47  ;;  %v395_v9 = vmul.f32 3.8918573e-05, %v2692_v48  ;;  %v2709_v10 = vmin.f32 %v422_v34, 16.0  ;;  %v769_v26 = vadd.f32 %v2272_v35, %v768_v54 }
  0xb8   : > { %v808_v63 = vmul.f32 %v2274_v45, %v807_v55  ;;  %v857_v11 = vor.u32 1.1754944e-38, %v856_v56  ;;  %v385_v19 = vadd.f32 0.00028619796, %v384_v58  ;;  %v733_v4 = vsel %vm732_vm9, %v2270_v17, %v729_v31 }
  0xb9   : > { %v396_v5 = vadd.f32 0.001143296, %v395_v9  ;;  %v424_v6 = vmul.f32 2.1237322e-06, %v2709_v10  ;;  %v435_v21 = vmul.f32 3.8918573e-05, %v2709_v10  ;;  %v738_v7 = vsel %vm2677_vm2, %v737_v38, %v733_v4 }
  0xba   : > { %v773_v14 = vsel %vm772_vm10, %v2272_v35, %v769_v26  ;;  %v809_v57 = vadd.f32 %v2274_v45, %v808_v63  ;;  %vm850_vm11 = vweird.f32 %v2690_v47  ;;  %v386_v23 = vmul.f32 %v385_v19, %v2692_v48 }
  0xbb   : > { %v2276_v28 = vpop.eup %2275  ;;  %v739_v17 = vmul.f32 %v738_v7, %v2652_v3  ;;  %v778_v60 = vsel %vm2685_vm3, %v777_v42, %v773_v14  ;;  %v397_v29 = vmul.f32 %v396_v5, %v2692_v48  ;;  %v425_v24 = vadd.f32 0.00028619796, %v424_v6 }
  0xbc   : > { %v779_v35 = vmul.f32 %v778_v60, %v2662_v15  ;;  %v813_v37 = vsel %vm812_vm12, %v2274_v45, %v809_v57  ;;  %v846_v38 = vmul.f32 %v2276_v28, %v2690_v47  ;;  %vm851_vm13 = vweird.f32 %v2276_v28 }
  0xbd   : > { %vm2732_vm14 = vcmp.eq.f32.partialorder %v854_v59, 8.507059e+37  ;;  %v2182_v3 = vclamps-f32 %v739_v17, 1.0  ;;  %v818_v25 = vsel %vm2697_vm7, %v817_v43, %v813_v37  ;;  %v387_v40 = vadd.f32 0.0036580483, %v386_v23  ;;  %vm852_vm15 = vmor %vm850_vm11, %vm851_vm13 }
  0xbe   : > { %v398_v61 = vadd.f32 0.014752088, %v397_v29  ;;  %v2183_v41 = vclamps-f32 %v779_v35, 1.0  ;;  %v819_v42 = vmul.f32 %v818_v25, %v2669_v27  ;;  %v847_v44 = vsub.f32 1.0, %v846_v38 }
  0xbf   : > { %v426_v15 = vmul.f32 %v425_v24, %v2709_v10  ;;  %v1030_v45 = vadd.f32 1.0, %v2182_v3  ;;  %v388_v46 = vmul.f32 %v387_v40, %v2692_v48  ;;  %v436_v49 = vadd.f32 0.001143296, %v435_v21 }
  0xc0   : > { %v399_v34 = vmul.f32 %v398_v61, %v2692_v48  ;;  %v1031_v50 = vadd.f32 1.0, %v2183_v41  ;;  %v2184_v52 = vclamps-f32 %v819_v42, 1.0  ;;  %v848_v54 = vmul.f32 %v2276_v28, %v847_v44 }
  0xc1   : > { %v427_v55 = vadd.f32 0.0036580483, %v426_v15  ;;  %v1046_v43 = vmul.f32 %v1030_v45, %v2630_v62  ;;  %v389_v51 = vadd.f32 0.05243302, %v388_v46  ;;  %v437_v58 = vmul.f32 %v436_v49, %v2709_v10 }
  0xc2   : > { %v400_v56 = vadd.f32 0.112945676, %v399_v34  ;;  %v1047_v27 = vmul.f32 %v1031_v50, %v2634_v33  ;;  %v1032_v31 = vadd.f32 1.0, %v2184_v52  ;;  %v849_v59 = vadd.f32 %v2276_v28, %v848_v54 }
  0xc3   : > { %v428_v9 = vmul.f32 %v427_v55, %v2709_v10  ;;  %1089 = vmatpush.msra.mxu0 %v1046_v43  ;;  %v390_v26 = vmul.f32 %v389_v51, %v2692_v48  ;;  %v438_v62 = vadd.f32 0.014752088, %v437_v58  ;;  %v2752_v19 = vmul.f32 0.70710677, %v2649_v20 }
  0xc4   : > { %v401_v63 = vmul.f32 %v400_v56, %v2692_v48  ;;  %1112 = vmatpush.msra.mxu1 %v1047_v27  ;;  %v1048_v33 = vmul.f32 %v1032_v31, %v2643_v1  ;;  %v853_v4 = vsel %vm852_vm15, %v2276_v28, %v849_v59  ;;  %v309_v6 = vmul.f32 %v293_v12, %v2599_v36 }
  0xc5   : > { %v429_v5 = vadd.f32 0.05243302, %v428_v9  ;;  %v858_v47 = vsel %vm2732_vm14, %v857_v11, %v853_v4  ;;  %v391_v21 = vadd.f32 0.18741608, %v390_v26  ;;  %v439_v14 = vmul.f32 %v438_v62, %v2709_v10 }
  0xc6   : > { %v402_v7 = vadd.f32 0.4994258, %v401_v63  ;;  %1135 = vmatpush.msra.mxu2 %v1048_v33  ;;  %v859_v57 = vmul.f32 %v858_v47, %v2702_v53  ;;  %v462_v1 = vmul.f32 %v2752_v19, %v2752_v19  ;;  %v2766_v28 = vadd.f32 %v2627_v32, %v309_v6 }
  0xc7   : > { %v430_v23 = vmul.f32 %v429_v5, %v2709_v10  ;;  %v440_v17 = vadd.f32 0.112945676, %v439_v14  ;;  %v392_v11 = vmul.f32 %v391_v21, %v2692_v48  ;;  %v361_v35 = vmul.f32 0.5, %v2544_v22 }
  0xc8   : > { %v403_v12 = vmul.f32 %v402_v7, %v2692_v48  ;;  %v2185_v60 = vclamps-f32 %v859_v57, 1.0  ;;  %v2770_v24 = vmin.f32 %v462_v1, 16.0  ;;  %v2775_v38 = vmul.f32 0.70710677, %v2766_v28 }
  0xc9   : > { %v431_v29 = vadd.f32 0.18741608, %v430_v23  ;;  %v441_v37 = vmul.f32 %v440_v17, %v2709_v10  ;;  %v294_v40 = vperm.slane %v2512_v8, 4  ;;  %v393_v61 = vadd.f32 1.1283791, %v392_v11 }
  0xca   : > { %v404_v53 = vadd.f32 1.0, %v403_v12  ;;  %v1033_v39 = vadd.f32 1.0, %v2185_v60  ;;  %v464_v3 = vmul.f32 2.1237322e-06, %v2770_v24  ;;  %v475_v25 = vmul.f32 3.8918573e-05, %v2770_v24 }
  0xcb   : > { %v432_v41 = vmul.f32 %v431_v29, %v2709_v10  ;;  %v442_v42 = vadd.f32 0.4994258, %v441_v37  ;;  %v502_v15 = vmul.f32 %v2775_v38, %v2775_v38  ;;  %v318_v34 = vmul.f32 %v294_v40, %v2518_v13 }
  0xcc   : > { %2277 = vrcp.f32 %v404_v53  ;;  %v1049_v48 = vmul.f32 %v1033_v39, %v361_v35  ;;  %v465_v22 = vadd.f32 0.00028619796, %v464_v3  ;;  %v476_v44 = vadd.f32 0.001143296, %v475_v25 }
  0xcd   : > { %v414_v45 = vand.u32 2147483647, %v404_v53  ;;  %v443_v46 = vmul.f32 %v442_v42, %v2709_v10  ;;  %v416_v49 = vand.u32 2147483648, %v404_v53  ;;  %v2789_v54 = vmin.f32 %v502_v15, 16.0 }
  0xce   : > { %1158 = vmatpush.msra.mxu3 %v1049_v48  ;;  %v466_v50 = vmul.f32 %v465_v22, %v2770_v24  ;;  %v477_v52 = vmul.f32 %v476_v44, %v2770_v24  ;;  %v2792_v55 = vmul.f32 0.5, %v2640_v0  ;;  %v394_v43 = vmul.f32 %v393_v61, %v2665_v16 }
  0xcf   : > { %v433_v51 = vadd.f32 1.1283791, %v432_v41  ;;  %v2795_v56 = vadd.f32 1.0, %v443_v46  ;;  %vm410_vm0 = vweird.f32 %v404_v53  ;;  %v504_v31 = vmul.f32 2.1237322e-06, %v2789_v54 }
  0xd0   : > { %v467_v58 = vadd.f32 0.0036580483, %v466_v50  ;;  %v478_v27 = vadd.f32 0.014752088, %v477_v52  ;;  %vm2798_vm1 = vcmp.eq.f32.partialorder %v414_v45, 8.507059e+37  ;;  %v2804_v0 = vadd.f32 %v2532_v18, %v318_v34 }
  0xd1   : > { %2279 = vrcp.f32 %v2795_v56  ;;  %v417_v16 = vor.u32 1.1754944e-38, %v416_v49  ;;  %v295_v62 = vperm.slane %v2512_v8, 5  ;;  %v2810_v4 = vmul.f32 %v433_v51, %v2674_v30 }
  0xd2   : > { %v2278_v10 = vpop.eup %2277  ;;  %v468_v26 = vmul.f32 %v467_v58, %v2770_v24  ;;  %v479_v63 = vmul.f32 %v478_v27, %v2770_v24  ;;  %v505_v5 = vadd.f32 0.00028619796, %v504_v31  ;;  %v515_v6 = vmul.f32 3.8918573e-05, %v2789_v54 }
  0xd3   : > { %v406_v59 = vmul.f32 %v2278_v10, %v404_v53  ;;  %vm411_vm2 = vweird.f32 %v2278_v10  ;;  %v296_v7 = vperm.slane %v2512_v8, 6  ;;  %v2816_v1 = vmul.f32 0.70710677, %v2804_v0 }
  0xd4   : > { %v469_v47 = vadd.f32 0.05243302, %v468_v26  ;;  %v480_v21 = vadd.f32 0.112945676, %v479_v63  ;;  %v506_v57 = vmul.f32 %v505_v5, %v2789_v54  ;;  %v516_v23 = vadd.f32 0.001143296, %v515_v6  ;;  %vm412_vm4 = vmor %vm410_vm0, %vm411_vm2 }
  0xd5   : > { %v407_v33 = vsub.f32 1.0, %v406_v59  ;;  %vm450_vm3 = vweird.f32 %v2795_v56  ;;  %v319_v17 = vmul.f32 %v295_v62, %v2518_v13  ;;  %v862_v37 = vmul.f32 %v2816_v1, %v2816_v1 }
  0xd6   : > { %v470_v30 = vmul.f32 %v469_v47, %v2770_v24  ;;  %v481_v12 = vmul.f32 %v480_v21, %v2770_v24  ;;  %v507_v29 = vadd.f32 0.0036580483, %v506_v57  ;;  %v517_v35 = vmul.f32 %v516_v23, %v2789_v54 }
  0xd7   : > { %v408_v14 = vmul.f32 %v2278_v10, %v407_v33  ;;  %v2280_v60 = vpop.eup %2279  ;;  %v454_v3 = vand.u32 2147483647, %v2795_v56  ;;  %v456_v25 = vand.u32 2147483648, %v2795_v56  ;;  %v2833_v22 = vmin.f32 %v862_v37, 16.0 }
  0xd8   : > { %v446_v39 = vmul.f32 %v2280_v60, %v2795_v56  ;;  %v482_v48 = vadd.f32 0.4994258, %v481_v12  ;;  %v508_v41 = vmul.f32 %v507_v29, %v2789_v54  ;;  %v518_v42 = vadd.f32 0.014752088, %v517_v35 }
  0xd9   : > { %v409_v11 = vadd.f32 %v2278_v10, %v408_v14  ;;  %v471_v45 = vadd.f32 0.18741608, %v470_v30  ;;  %v864_v50 = vmul.f32 2.1237322e-06, %v2833_v22  ;;  %vm451_vm5 = vweird.f32 %v2280_v60 }
  0xda   : > { %v447_v15 = vsub.f32 1.0, %v446_v39  ;;  %v483_v53 = vmul.f32 %v482_v48, %v2770_v24  ;;  %v509_v34 = vadd.f32 0.05243302, %v508_v41  ;;  %v519_v49 = vmul.f32 %v518_v42, %v2789_v54  ;;  %vm452_vm7 = vmor %vm450_vm3, %vm451_vm5 }
  0xdb   : > { %v413_v61 = vsel %vm412_vm4, %v2278_v10, %v409_v11  ;;  %v875_v10 = vmul.f32 3.8918573e-05, %v2833_v22  ;;  %v865_v59 = vadd.f32 0.00028619796, %v864_v50  ;;  %vm455_vm6 = vcmp.eq.f32.partialorder %v454_v3, 8.507059e+37 }
  0xdc   : > { %v418_v44 = vsel %vm2798_vm1, %v417_v16, %v413_v61  ;;  %v448_v52 = vmul.f32 %v2280_v60, %v447_v15  ;;  %v2840_v51 = vadd.f32 1.0, %v483_v53  ;;  %v510_v27 = vmul.f32 %v509_v34, %v2789_v54 }
  0xdd   : > { %v419_v46 = vmul.f32 %v418_v44, %v394_v43  ;;  %v520_v31 = vadd.f32 0.112945676, %v519_v49  ;;  %v457_v16 = vor.u32 1.1754944e-38, %v456_v25  ;;  %v472_v26 = vmul.f32 %v471_v45, %v2770_v24  ;;  %v2861_v24 = vld [vmem:[%s4015_s3] sm:$0xff] }
  0xde   : > { %v449_v9 = vadd.f32 %v2280_v60, %v448_v52  ;;  %2281 = vrcp.f32 %v2840_v51  ;;  %v511_v63 = vadd.f32 0.18741608, %v510_v27  ;;  %v2849_v33 = vadd.f32 %v2532_v18, %v319_v17 }
  0xdf   : > { %v2174_v58 = vclamps-f32 %v419_v46, 1.0  ;;  %v521_v6 = vmul.f32 %v520_v31, %v2789_v54  ;;  %v866_v47 = vmul.f32 %v865_v59, %v2833_v22  ;;  %v876_v21 = vadd.f32 0.001143296, %v875_v10 }
  0xe0   : > { %v453_v5 = vsel %vm452_vm7, %v2280_v60, %v449_v9  ;;  %v351_v57 = vmul.f32 0.5, %v2646_v2  ;;  %v2856_v56 = vmul.f32 0.5, %v2649_v20  ;;  %vm1068_vm8 = vcmask 130048  }
  0xe1   : > { %v1022_v43 = vadd.f32 1.0, %v2174_v58  ;;  %v458_v23 = vsel %vm455_vm6, %v457_v16, %v453_v5  ;;  %v522_v12 = vadd.f32 0.4994258, %v521_v6  ;;  %v320_v17 = vmul.f32 %v296_v7, %v2518_v13 }
  0xe2   : > { %v459_v30 = vmul.f32 %v458_v23, %v2810_v4  ;;  %v2868_v2 = vmul.f32 0.5, %v2766_v28  ;;  %v877_v20 = vmul.f32 %v876_v21, %v2833_v22  ;;  %v2872_v60 = vmul.f32 0.70710677, %v2849_v33 }
  0xe3   : > { %v1038_v14 = vmul.f32 %v1022_v43, %v2792_v55  ;;  %v867_v55 = vadd.f32 0.0036580483, %v866_v47  ;;  %v473_v35 = vadd.f32 1.1283791, %v472_v26  ;;  %v512_v4 = vmul.f32 %v511_v63, %v2789_v54 }
  0xe4   : > { %v2282_v11 = vpop.eup %2281  ;;  %v2175_v29 = vclamps-f32 %v459_v30, 1.0  ;;  %v523_v37 = vmul.f32 %v522_v12, %v2789_v54  ;;  %v494_v28 = vand.u32 2147483647, %v2840_v51  ;;  %v878_v25 = vadd.f32 0.014752088, %v877_v20 }
  0xe5   : > { %1090 = vmatpush.msra.mxu0 %v1038_v14  ;;  %v486_v39 = vmul.f32 %v2282_v11, %v2840_v51  ;;  %v868_v3 = vmul.f32 %v867_v55, %v2833_v22  ;;  %v902_v41 = vmul.f32 %v2872_v60, %v2872_v60  ;;  %v2886_v42 = vadd.f32 %v2532_v18, %v320_v17 }
  0xe6   : > { %2190 = vmatmul.msk.f32.vlgmr.msra.gmra.mxu0 %vm1068_vm8, %v2861_v24  ;;  %v1023_v48 = vadd.f32 1.0, %v2175_v29  ;;  %v2881_v61 = vadd.f32 1.0, %v523_v37  ;;  %v496_v44 = vand.u32 2147483648, %v2840_v51  ;;  %v879_v45 = vmul.f32 %v878_v25, %v2833_v22 }
  0xe7   : > { %v487_v54 = vsub.f32 1.0, %v486_v39  ;;  %v869_v15 = vadd.f32 0.05243302, %v868_v3  ;;  %v513_v46 = vadd.f32 1.1283791, %v512_v4  ;;  %v297_v34 = vperm.slane %v2512_v8, 7 }
  0xe8   : > { %v1039_v53 = vmul.f32 %v1023_v48, %v351_v57  ;;  %2283 = vrcp.f32 %v2881_v61  ;;  %v474_v49 = vmul.f32 %v473_v35, %v2752_v19  ;;  %vm491_vm9 = vweird.f32 %v2282_v11 }
  0xe9   : > { %v488_v50 = vmul.f32 %v2282_v11, %v487_v54  ;;  %v880_v52 = vadd.f32 0.112945676, %v879_v45  ;;  %vm490_vm10 = vweird.f32 %v2840_v51  ;;  %vm2894_vm11 = vcmp.eq.f32.partialorder %v494_v28, 8.507059e+37 }
  0xea   : > { %1113 = vmatpush.msra.mxu1 %v1039_v53  ;;  %v2898_v58 = vmin.f32 %v902_v41, 16.0  ;;  %v2901_v27 = vmul.f32 0.70710677, %v2886_v42  ;;  %v497_v59 = vor.u32 1.1754944e-38, %v496_v44  ;;  %v870_v19 = vmul.f32 %v869_v15, %v2833_v22  ;;  %vm492_vm12 = vmor %vm490_vm10, %vm491_vm9 }
  0xeb   : > { %v489_v31 = vadd.f32 %v2282_v11, %v488_v50  ;;  %2192 = vmatmul.msk.f32.vlgmr.msra.gmra.mxu1 %vm1068_vm8, %v2861_v24  ;;  %v881_v9 = vmul.f32 %v880_v52, %v2833_v22  ;;  %v514_v51 = vmul.f32 %v513_v46, %v2775_v38  ;;  %v534_v5 = vand.u32 2147483647, %v2881_v61 }
  0xec   : > { %v904_v16 = vmul.f32 2.1237322e-06, %v2898_v58  ;;  %v915_v43 = vmul.f32 3.8918573e-05, %v2898_v58  ;;  %v942_v26 = vmul.f32 %v2901_v27, %v2901_v27  ;;  %v321_v47 = vmul.f32 %v297_v34, %v2518_v13 }
  0xed   : > { %v493_v63 = vsel %vm492_vm12, %v2282_v11, %v489_v31  ;;  %v882_v6 = vadd.f32 0.4994258, %v881_v9  ;;  %v536_v17 = vand.u32 2147483648, %v2881_v61  ;;  %v871_v55 = vadd.f32 0.18741608, %v870_v19 }
  0xee   : > { %v2284_v21 = vpop.eup %2283  ;;  %v498_v14 = vsel %vm2894_vm11, %v497_v59, %v493_v63  ;;  %v905_v38 = vadd.f32 0.00028619796, %v904_v16  ;;  %v916_v57 = vadd.f32 0.001143296, %v915_v43  ;;  %v2918_v23 = vmin.f32 %v942_v26, 16.0 }
  0xef   : > { %v499_v30 = vmul.f32 %v498_v14, %v474_v49  ;;  %v526_v12 = vmul.f32 %v2284_v21, %v2881_v61  ;;  %v883_v20 = vmul.f32 %v882_v6, %v2833_v22  ;;  %v2928_v39 = vadd.f32 %v2532_v18, %v321_v47 }
  0xf0   : > { %v906_v11 = vmul.f32 %v905_v38, %v2898_v58  ;;  %v917_v13 = vmul.f32 %v916_v57, %v2898_v58  ;;  %v944_v29 = vmul.f32 2.1237322e-06, %v2918_v23  ;;  %v955_v37 = vmul.f32 3.8918573e-05, %v2918_v23 }
  0xf1   : > { %v2176_v35 = vclamps-f32 %v499_v30, 1.0  ;;  %v527_v4 = vsub.f32 1.0, %v526_v12  ;;  %vm531_vm13 = vweird.f32 %v2284_v21  ;;  %v2930_v28 = vadd.f32 1.0, %v883_v20 }
  0xf2   : > { %v907_v3 = vadd.f32 0.0036580483, %v906_v11  ;;  %v918_v25 = vadd.f32 0.014752088, %v917_v13  ;;  %v945_v54 = vadd.f32 0.00028619796, %v944_v29  ;;  %vm530_vm14 = vweird.f32 %v2881_v61 }
  0xf3   : > { %v1024_v48 = vadd.f32 1.0, %v2176_v35  ;;  %v528_v41 = vmul.f32 %v2284_v21, %v527_v4  ;;  %v956_v44 = vadd.f32 0.001143296, %v955_v37  ;;  %vm2933_vm15 = vcmp.eq.f32.partialorder %v534_v5, 8.507059e+37  ;;  %vm532_vm0 = vmor %vm530_vm14, %vm531_vm13 }
  0xf4   : > { %2285 = vrcp.f32 %v2930_v28  ;;  %v310_v18 = vmul.f32 %v294_v40, %v2599_v36  ;;  %v908_v46 = vmul.f32 %v907_v3, %v2898_v58  ;;  %v919_v49 = vmul.f32 %v918_v25, %v2898_v58 }
  0xf5   : > { %v1040_v45 = vmul.f32 %v1024_v48, %v2856_v56  ;;  %v529_v53 = vadd.f32 %v2284_v21, %v528_v41  ;;  %v537_v61 = vor.u32 1.1754944e-38, %v536_v17  ;;  %v872_v50 = vmul.f32 %v871_v55, %v2833_v22 }
  0xf6   : > { %v946_v52 = vmul.f32 %v945_v54, %v2918_v23  ;;  %v957_v10 = vmul.f32 %v956_v44, %v2918_v23  ;;  %v909_v59 = vadd.f32 0.05243302, %v908_v46  ;;  %v920_v40 = vadd.f32 0.112945676, %v919_v49 }
  0xf7   : > { %1136 = vmatpush.msra.mxu2 %v1040_v45  ;;  %v533_v31 = vsel %vm532_vm0, %v2284_v21, %v529_v53  ;;  %v2949_v56 = vmul.f32 0.70710677, %v2928_v39  ;;  %v2956_v22 = vadd.f32 %v2627_v32, %v310_v18  ;;  %v873_v47 = vadd.f32 1.1283791, %v872_v50 }
  0xf8   : > { %v538_v19 = vsel %vm2933_vm15, %v537_v61, %v533_v31  ;;  %2194 = vmatmul.msk.f32.vlgmr.msra.gmra.mxu2 %vm1068_vm8, %v2861_v24  ;;  %v947_v9 = vadd.f32 0.0036580483, %v946_v52  ;;  %v958_v16 = vadd.f32 0.014752088, %v957_v10  ;;  %v910_v26 = vmul.f32 %v909_v59, %v2898_v58 }
  0xf9   : > { %v539_v43 = vmul.f32 %v538_v19, %v514_v51  ;;  %v921_v63 = vmul.f32 %v920_v40, %v2898_v58  ;;  %v982_v5 = vmul.f32 %v2949_v56, %v2949_v56  ;;  %v2965_v38 = vmul.f32 0.70710677, %v2956_v22 }
  0xfa   : > { %v2286_v6 = vpop.eup %2285  ;;  %v948_v21 = vmul.f32 %v947_v9, %v2918_v23  ;;  %v959_v14 = vmul.f32 %v958_v16, %v2918_v23  ;;  %v894_v51 = vand.u32 2147483647, %v2930_v28  ;;  %v911_v12 = vadd.f32 0.18741608, %v910_v26 }
  0xfb   : > { %v2177_v57 = vclamps-f32 %v539_v43, 1.0  ;;  %v886_v30 = vmul.f32 %v2286_v6, %v2930_v28  ;;  %v922_v17 = vadd.f32 0.4994258, %v921_v63  ;;  %v896_v29 = vand.u32 2147483648, %v2930_v28 }
  0xfc   : > { %v949_v55 = vadd.f32 0.05243302, %v948_v21  ;;  %v960_v20 = vadd.f32 0.112945676, %v959_v14  ;;  %v2970_v35 = vmin.f32 %v982_v5, 16.0  ;;  %v542_v25 = vmul.f32 %v2965_v38, %v2965_v38 }
  0xfd   : > { %v1025_v11 = vadd.f32 1.0, %v2177_v57  ;;  %v887_v13 = vsub.f32 1.0, %v886_v30  ;;  %v923_v4 = vmul.f32 %v922_v17, %v2898_v58  ;;  %vm891_vm1 = vweird.f32 %v2286_v6 }
  0xfe   : > { %v950_v37 = vmul.f32 %v949_v55, %v2918_v23  ;;  %v961_v3 = vmul.f32 %v960_v20, %v2918_v23  ;;  %v984_v54 = vmul.f32 2.1237322e-06, %v2970_v35  ;;  %v874_v44 = vmul.f32 %v873_v47, %v2816_v1 }
  0xff   : > { %v1041_v48 = vmul.f32 %v1025_v11, %v2868_v2  ;;  %v888_v41 = vmul.f32 %v2286_v6, %v887_v13  ;;  %v912_v15 = vmul.f32 %v911_v12, %v2898_v58  ;;  %v2981_v18 = vadd.f32 1.0, %v923_v4 }
 0x100   : > { %v962_v45 = vadd.f32 0.4994258, %v961_v3  ;;  %vm890_vm2 = vweird.f32 %v2930_v28  ;;  %v985_v46 = vadd.f32 0.00028619796, %v984_v54  ;;  %v995_v49 = vmul.f32 3.8918573e-05, %v2970_v35 }
 0x101   : > { %1159 = vmatpush.msra.mxu3 %v1041_v48  ;;  %v889_v53 = vadd.f32 %v2286_v6, %v888_v41  ;;  %vm892_vm3 = vmor %vm890_vm2, %vm891_vm1  ;;  %v897_v2 = vor.u32 1.1754944e-38, %v896_v29  ;;  %2287 = vrcp.f32 %v2981_v18  ;;  %v951_v1 = vadd.f32 0.18741608, %v950_v37 }
 0x102   : > { %2196 = vmatmul.msk.f32.vlgmr.msra.gmra.mxu3 %vm1068_vm8, %v2861_v24  ;;  %v2988_v61 = vmin.f32 %v542_v25, 16.0  ;;  %vm895_vm4 = vcmp.eq.f32.partialorder %v894_v51, 8.507059e+37  ;;  %v963_v50 = vmul.f32 %v962_v45, %v2918_v23  ;;  %v986_v52 = vmul.f32 %v985_v46, %v2970_v35 }
 0x103   : > { %v893_v58 = vsel %vm892_vm3, %v2286_v6, %v889_v53  ;;  %v913_v10 = vadd.f32 1.1283791, %v912_v15  ;;  %v996_v31 = vadd.f32 0.001143296, %v995_v49  ;;  %v311_v59 = vmul.f32 %v295_v62, %v2599_v36 }
 0x104   : > { %v898_v28 = vsel %vm895_vm4, %v897_v2, %v893_v58  ;;  %v2995_v19 = vadd.f32 1.0, %v963_v50  ;;  %v987_v9 = vadd.f32 0.0036580483, %v986_v52  ;;  %v934_v16 = vand.u32 2147483647, %v2981_v18 }
 0x105   : > { %v899_v40 = vmul.f32 %v898_v28, %v874_v44  ;;  %v952_v43 = vmul.f32 %v951_v1, %v2918_v23  ;;  %v997_v26 = vmul.f32 %v996_v31, %v2970_v35  ;;  %v544_v63 = vmul.f32 2.1237322e-06, %v2988_v61 }
 0x106   : > { %v362_v5 = vmul.f32 0.5, %v2804_v0  ;;  %2289 = vrcp.f32 %v2995_v19  ;;  %v555_v47 = vmul.f32 3.8918573e-05, %v2988_v61  ;;  %v914_v21 = vmul.f32 %v913_v10, %v2872_v60 }
 0x107   : > { %v2186_v6 = vclamps-f32 %v899_v40, 1.0  ;;  %v2288_v62 = vpop.eup %2287  ;;  %v936_v14 = vand.u32 2147483648, %v2981_v18  ;;  %v998_v57 = vadd.f32 0.014752088, %v997_v26  ;;  %v3007_v30 = vadd.f32 %v2627_v32, %v311_v59 }
 0x108   : > { %v926_v51 = vmul.f32 %v2288_v62, %v2981_v18  ;;  %v988_v12 = vmul.f32 %v987_v9, %v2970_v35  ;;  %v545_v0 = vadd.f32 0.00028619796, %v544_v63  ;;  %vm930_vm5 = vweird.f32 %v2981_v18 }
 0x109   : > { %v1034_v23 = vadd.f32 1.0, %v2186_v6  ;;  %vm3012_vm6 = vcmp.eq.f32.partialorder %v934_v16, 8.507059e+37  ;;  %v953_v55 = vadd.f32 1.1283791, %v952_v43  ;;  %v999_v60 = vmul.f32 %v998_v57, %v2970_v35 }
 0x10a   : > { %v927_v11 = vsub.f32 1.0, %v926_v51  ;;  %v546_v13 = vmul.f32 %v545_v0, %v2988_v61  ;;  %v556_v29 = vadd.f32 0.001143296, %v555_v47  ;;  %vm931_vm7 = vweird.f32 %v2288_v62 }
 0x10b   : > { %v1050_v20 = vmul.f32 %v1034_v23, %v362_v5  ;;  %v937_v4 = vor.u32 1.1754944e-38, %v936_v14  ;;  %v1000_v37 = vadd.f32 0.112945676, %v999_v60  ;;  %v3019_v3 = vmul.f32 0.70710677, %v3007_v30  ;;  %vm932_vm10 = vmor %vm930_vm5, %vm931_vm7 }
 0x10c   : > { %v2290_v25 = vpop.eup %2289  ;;  %v928_v48 = vmul.f32 %v2288_v62, %v927_v11  ;;  %v989_v41 = vadd.f32 0.05243302, %v988_v12  ;;  %v547_v54 = vadd.f32 0.0036580483, %v546_v13  ;;  %v557_v44 = vmul.f32 %v556_v29, %v2988_v61 }
 0x10d   : > { %1181 = vmatpush.msrb.mxu0 %v1050_v20  ;;  %v954_v15 = vmul.f32 %v953_v55, %v2901_v27  ;;  %v966_v45 = vmul.f32 %v2290_v25, %v2995_v19  ;;  %vm970_vm9 = vweird.f32 %v2995_v19  ;;  %v1001_v53 = vmul.f32 %v1000_v37, %v2970_v35 }
 0x10e   : > { %v929_v46 = vadd.f32 %v2288_v62, %v928_v48  ;;  %v974_v49 = vand.u32 2147483647, %v2995_v19  ;;  %v558_v2 = vadd.f32 0.014752088, %v557_v44  ;;  %v582_v1 = vmul.f32 %v3019_v3, %v3019_v3 }
 0x10f   : > { %v967_v58 = vsub.f32 1.0, %v966_v45  ;;  %v976_v27 = vand.u32 2147483648, %v2995_v19  ;;  %v1002_v50 = vadd.f32 0.4994258, %v1001_v53  ;;  %v548_v52 = vmul.f32 %v547_v54, %v2988_v61 }
 0x110   : > { %v933_v28 = vsel %vm932_vm10, %v2288_v62, %v929_v46  ;;  %v990_v10 = vmul.f32 %v989_v41, %v2970_v35  ;;  %v559_v31 = vmul.f32 %v558_v2, %v2988_v61  ;;  %v3036_v59 = vmin.f32 %v582_v1, 16.0 }
 0x111   : > { %v938_v40 = vsel %vm3012_vm6, %v937_v4, %v933_v28  ;;  %v968_v9 = vmul.f32 %v2290_v25, %v967_v58  ;;  %vm971_vm11 = vweird.f32 %v2290_v25  ;;  %v1003_v18 = vmul.f32 %v1002_v50, %v2970_v35 }
 0x112   : > { %v939_v16 = vmul.f32 %v938_v40, %v914_v21  ;;  %v560_v43 = vadd.f32 0.112945676, %v559_v31  ;;  %v584_v26 = vmul.f32 2.1237322e-06, %v3036_v59  ;;  %v312_v63 = vmul.f32 %v296_v7, %v2599_v36  ;;  %vm972_vm12 = vmor %vm970_vm9, %vm971_vm11 }
 0x113   : > { %v969_v5 = vadd.f32 %v2290_v25, %v968_v9  ;;  %v977_v6 = vor.u32 1.1754944e-38, %v976_v27  ;;  %v3045_v47 = vadd.f32 1.0, %v1003_v18  ;;  %v549_v62 = vadd.f32 0.05243302, %v548_v52 }
 0x114   : > { %v2187_v14 = vclamps-f32 %v939_v16, 1.0  ;;  %v561_v57 = vmul.f32 %v560_v43, %v2988_v61  ;;  %v585_v23 = vadd.f32 0.00028619796, %v584_v26  ;;  %v595_v21 = vmul.f32 3.8918573e-05, %v3036_v59 }
 0x115   : > { %v973_v51 = vsel %vm972_vm12, %v2290_v25, %v969_v5  ;;  %vm975_vm13 = vcmp.eq.f32.partialorder %v974_v49, 8.507059e+37  ;;  %v991_v12 = vadd.f32 0.18741608, %v990_v10  ;;  %2291 = vrcp.f32 %v3045_v47 }
 0x116   : > { %v363_v7 = vmul.f32 0.5, %v2849_v33  ;;  %v1035_v0 = vadd.f32 1.0, %v2187_v14  ;;  %v978_v17 = vsel %vm975_vm13, %v977_v6, %v973_v51  ;;  %v3054_v55 = vadd.f32 %v2627_v32, %v312_v63 }
 0x117   : > { %v979_v60 = vmul.f32 %v978_v17, %v954_v15  ;;  %v550_v19 = vmul.f32 %v549_v62, %v2988_v61  ;;  %v562_v20 = vadd.f32 0.4994258, %v561_v57  ;;  %v586_v13 = vmul.f32 %v585_v23, %v3036_v59 }
 0x118   : > { %v1051_v11 = vmul.f32 %v1035_v0, %v363_v7  ;;  %v596_v29 = vadd.f32 0.001143296, %v595_v21  ;;  %v992_v37 = vmul.f32 %v991_v12, %v2970_v35  ;;  %v364_v33 = vmul.f32 0.5, %v2886_v42 }
 0x119   : > { %v2188_v4 = vclamps-f32 %v979_v60, 1.0  ;;  %v563_v25 = vmul.f32 %v562_v20, %v2988_v61  ;;  %v3063_v41 = vmul.f32 0.70710677, %v3054_v55  ;;  %v551_v15 = vadd.f32 0.18741608, %v550_v19 }
 0x11a   : > { %1204 = vmatpush.msrb.mxu1 %v1051_v11  ;;  %v597_v48 = vmul.f32 %v596_v29, %v3036_v59  ;;  %v313_v53 = vmul.f32 %v297_v34, %v2599_v36  ;;  %v587_v46 = vadd.f32 0.0036580483, %v586_v13  ;;  %v993_v1 = vadd.f32 1.1283791, %v992_v37 }
 0x11b   : > { %v2292_v54 = vpop.eup %2291  ;;  %v1036_v44 = vadd.f32 1.0, %v2188_v4  ;;  %v3065_v45 = vadd.f32 1.0, %v563_v25  ;;  %v622_v42 = vmul.f32 %v3063_v41, %v3063_v41  ;;  %v1014_v27 = vand.u32 2147483647, %v3045_v47 }
 0x11c   : > { %v1006_v35 = vmul.f32 %v2292_v54, %v3045_v47  ;;  %v598_v49 = vadd.f32 0.014752088, %v597_v48  ;;  %v1016_v8 = vand.u32 2147483648, %v3045_v47  ;;  %v552_v36 = vmul.f32 %v551_v15, %v2988_v61 }
 0x11d   : > { %v1052_v2 = vmul.f32 %v1036_v44, %v364_v33  ;;  %2293 = vrcp.f32 %v3065_v45  ;;  %v3078_v34 = vmin.f32 %v622_v42, 16.0  ;;  %v3081_v52 = vadd.f32 %v2627_v32, %v313_v53 }
 0x11e   : > { %v1007_v58 = vsub.f32 1.0, %v1006_v35  ;;  %v599_v50 = vmul.f32 %v598_v49, %v3036_v59  ;;  %vm1011_vm14 = vweird.f32 %v2292_v54  ;;  %v588_v10 = vmul.f32 %v587_v46, %v3036_v59 }
 0x11f   : > { %1227 = vmatpush.msrb.mxu2 %v1052_v2  ;;  %v365_v40 = vmul.f32 0.5, %v2928_v39  ;;  %v994_v9 = vmul.f32 %v993_v1, %v2949_v56  ;;  %v624_v18 = vmul.f32 2.1237322e-06, %v3078_v34  ;;  %v635_v16 = vmul.f32 3.8918573e-05, %v3078_v34 }
 0x120   : > { %v1008_v28 = vmul.f32 %v2292_v54, %v1007_v58  ;;  %v600_v31 = vadd.f32 0.112945676, %v599_v50  ;;  %vm1010_vm15 = vweird.f32 %v3045_v47  ;;  %v3091_v32 = vmul.f32 0.70710677, %v3081_v52 }
 0x121   : > { %vm1012_vm0 = vmor %vm1010_vm15, %vm1011_vm14  ;;  %vm1015_vm1 = vcmp.eq.f32.partialorder %v1014_v27, 8.507059e+37  ;;  %v1017_v63 = vor.u32 1.1754944e-38, %v1016_v8  ;;  %v625_v5 = vadd.f32 0.00028619796, %v624_v18  ;;  %v636_v39 = vadd.f32 0.001143296, %v635_v16 }
 0x122   : > { %v1009_v43 = vadd.f32 %v2292_v54, %v1008_v28  ;;  %v601_v61 = vmul.f32 %v600_v31, %v3036_v59  ;;  %v553_v56 = vadd.f32 1.1283791, %v552_v36  ;;  %v589_v14 = vadd.f32 0.05243302, %v588_v10 }
 0x123   : > { %v2294_v26 = vpop.eup %2293  ;;  %v626_v47 = vmul.f32 %v625_v5, %v3078_v34  ;;  %v637_v21 = vmul.f32 %v636_v39, %v3078_v34  ;;  %vm570_vm2 = vweird.f32 %v3065_v45  ;;  %v662_v7 = vmul.f32 %v3091_v32, %v3091_v32 }
 0x124   : > { %v1013_v6 = vsel %vm1012_vm0, %v2292_v54, %v1009_v43  ;;  %v566_v62 = vmul.f32 %v2294_v26, %v3065_v45  ;;  %v602_v23 = vadd.f32 0.4994258, %v601_v61  ;;  %v574_v0 = vand.u32 2147483647, %v3065_v45 }
 0x125   : > { %v1018_v57 = vsel %vm1015_vm1, %v1017_v63, %v1013_v6  ;;  %v576_v17 = vand.u32 2147483648, %v3065_v45  ;;  %v638_v19 = vadd.f32 0.014752088, %v637_v21  ;;  %vm571_vm3 = vweird.f32 %v2294_v26 }
 0x126   : > { %v1019_v51 = vmul.f32 %v1018_v57, %v994_v9  ;;  %v567_v12 = vsub.f32 1.0, %v566_v62  ;;  %v603_v60 = vmul.f32 %v602_v23, %v3036_v59  ;;  %v3102_v13 = vmin.f32 %v662_v7, 16.0  ;;  %vm572_vm4 = vmor %vm570_vm2, %vm571_vm3 }
 0x127   : > { %v590_v29 = vmul.f32 %v589_v14, %v3036_v59  ;;  %v627_v37 = vadd.f32 0.0036580483, %v626_v47  ;;  %v639_v25 = vmul.f32 %v638_v19, %v3078_v34  ;;  %v554_v15 = vmul.f32 %v553_v56, %v2965_v38 }
 0x128   : > { %v2189_v20 = vclamps-f32 %v1019_v51, 1.0  ;;  %v568_v11 = vmul.f32 %v2294_v26, %v567_v12  ;;  %v604_v4 = vadd.f32 1.0, %v603_v60  ;;  %v664_v54 = vmul.f32 2.1237322e-06, %v3102_v13 }
 0x129   : > { %v675_v44 = vmul.f32 3.8918573e-05, %v3102_v13  ;;  %v577_v53 = vor.u32 1.1754944e-38, %v576_v17  ;;  %vm575_vm5 = vcmp.eq.f32.partialorder %v574_v0, 8.507059e+37  ;;  %v640_v49 = vadd.f32 0.112945676, %v639_v25 }
 0x12a   : > { %v1037_v33 = vadd.f32 1.0, %v2189_v20  ;;  %v569_v48 = vadd.f32 %v2294_v26, %v568_v11  ;;  %2295 = vrcp.f32 %v604_v4  ;;  %v628_v2 = vmul.f32 %v627_v37, %v3078_v34  ;;  %v3126_v20 = vld [vmem:[%s4015_s3 + $0x8] sm:$0xff] }
 0x12b   : > { %v665_v1 = vadd.f32 0.00028619796, %v664_v54  ;;  %v591_v27 = vadd.f32 0.18741608, %v590_v29  ;;  %v641_v50 = vmul.f32 %v640_v49, %v3078_v34  ;;  %v676_v8 = vadd.f32 0.001143296, %v675_v44  ;;  %2191 = vmatmul.msk.f32.gmra.mxu0 %vm1068_vm8, %v3126_v20  ;;  %2193 = vmatmul.msk.f32.gmra.mxu1 %vm1068_vm8, %v3126_v20 }
 0x12c   : > { %v1053_v35 = vmul.f32 %v1037_v33, %v365_v40  ;;  %v573_v46 = vsel %vm572_vm4, %v2294_v26, %v569_v48  ;;  %v629_v10 = vadd.f32 0.05243302, %v628_v2  ;;  %v354_v40 = vmul.f32 0.5, %v2956_v22  ;;  %2195 = vmatmul.msk.f32.gmra.mxu2 %vm1068_vm8, %v3126_v20  ;;  %2197 = vmatmul.msk.f32.gmra.mxu3 %vm1068_vm8, %v3126_v20 }
 0x12d   : > { %v578_v42 = vsel %vm575_vm5, %v577_v53, %v573_v46  ;;  %v642_v36 = vadd.f32 0.4994258, %v641_v50  ;;  %v677_v45 = vmul.f32 %v676_v8, %v3102_v13  ;;  %v666_v31 = vmul.f32 %v665_v1, %v3102_v13 }
 0x12e   : > { %1250 = vmatpush.msrb.mxu3 %v1053_v35  ;;  %v579_v58 = vmul.f32 %v578_v42, %v554_v15  ;;  %v592_v18 = vmul.f32 %v591_v27, %v3036_v59  ;;  %v616_v5 = vand.u32 2147483648, %v604_v4  ;;  %v630_v39 = vmul.f32 %v629_v10, %v3078_v34  ;;  %v1057_v10 = vld [vmem:[%s4016_s4 + $0x8] sm:$0xff] }
 0x12f   : > { %v643_v43 = vmul.f32 %v642_v36, %v3078_v34  ;;  %v678_v61 = vadd.f32 0.014752088, %v677_v45  ;;  %v667_v56 = vadd.f32 0.0036580483, %v666_v31  ;;  %v614_v22 = vand.u32 2147483647, %v604_v4 }
 0x130   : > { %v2178_v38 = vclamps-f32 %v579_v58, 1.0  ;;  %v2296_v28 = vpop.eup %2295  ;;  %v593_v14 = vadd.f32 1.1283791, %v592_v18  ;;  %vm610_vm7 = vweird.f32 %v604_v4  ;;  %v617_v47 = vor.u32 1.1754944e-38, %v616_v5 }
 0x131   : > { %v606_v16 = vmul.f32 %v2296_v28, %v604_v4  ;;  %v644_v6 = vadd.f32 1.0, %v643_v43  ;;  %v679_v62 = vmul.f32 %v678_v61, %v3102_v13  ;;  %vm611_vm6 = vweird.f32 %v2296_v28 }
 0x132   : > { %v1026_v9 = vadd.f32 1.0, %v2178_v38  ;;  %vm612_vm9 = vmor %vm610_vm7, %vm611_vm6  ;;  %v631_v21 = vadd.f32 0.18741608, %v630_v39  ;;  %v668_v51 = vmul.f32 %v667_v56, %v3102_v13  ;;  %v594_v12 = vmul.f32 %v593_v14, %v3019_v3  ;;  %v2047_v39 = vld [vmem:[#allocation2] sm:$0x1] }
 0x133   : > { %v607_v63 = vsub.f32 1.0, %v606_v16  ;;  %2297 = vrcp.f32 %v644_v6  ;;  %v680_v23 = vadd.f32 0.112945676, %v679_v62  ;;  %vm615_vm10 = vcmp.eq.f32.partialorder %v614_v22, 8.507059e+37 }
 0x134   : > { %v1042_v26 = vmul.f32 %v1026_v9, %v354_v40  ;;  %v632_v29 = vmul.f32 %v631_v21, %v3078_v34  ;;  %v669_v4 = vadd.f32 0.05243302, %v668_v51  ;;  %v355_v33 = vmul.f32 0.5, %v3007_v30  ;;  %v1056_v30 = vld [vmem:[%s4016_s4] sm:$0xff] }
 0x135   : > { %v608_v57 = vmul.f32 %v2296_v28, %v607_v63  ;;  %v681_v0 = vmul.f32 %v680_v23, %v3102_v13  ;;  %v656_v44 = vand.u32 2147483648, %v644_v6  ;;  %v654_v49 = vand.u32 2147483647, %v644_v6  ;;  %1060 = vperm.xlu2 %2268, %v1056_v30  }
 0x136   : > { %1182 = vmatpush.msrb.mxu0 %v1042_v26  ;;  %v633_v54 = vadd.f32 1.1283791, %v632_v29  ;;  %v670_v15 = vmul.f32 %v669_v4, %v3102_v13  ;;  %vm650_vm12 = vweird.f32 %v644_v6  ;;  %v356_v31 = vmul.f32 0.5, %v3054_v55 }
 0x137   : > { %v609_v59 = vadd.f32 %v2296_v28, %v608_v57  ;;  %v682_v19 = vadd.f32 0.4994258, %v681_v0  ;;  %v657_v2 = vor.u32 1.1754944e-38, %v656_v44  ;;  %2198 = vmatmul.msk.f32.vlgmr.msrb.gmra.mxu0 %vm1068_vm8, %v2861_v24  ;;  %vm655_vm14 = vcmp.eq.f32.partialorder %v654_v49, 8.507059e+37 }
 0x138   : > { %v671_v1 = vadd.f32 0.18741608, %v670_v15  ;;  %v634_v58 = vmul.f32 %v633_v54, %v3063_v41  ;;  %v357_v62 = vmul.f32 0.5, %v3081_v52 }
 0x139   : > { %v613_v7 = vsel %vm612_vm9, %v2296_v28, %v609_v59  ;;  %v2298_v11 = vpop.eup %2297  ;;  %v683_v25 = vmul.f32 %v682_v19, %v3102_v13 }
 0x13a   : > { %v618_v17 = vsel %vm615_vm10, %v617_v47, %v613_v7  ;;  %v646_v37 = vmul.f32 %v2298_v11, %v644_v6  ;;  %vm651_vm11 = vweird.f32 %v2298_v11  ;;  %v672_v36 = vmul.f32 %v671_v1, %v3102_v13 }
 0x13b   : > { %v619_v60 = vmul.f32 %v618_v17, %v594_v12  ;;  %v684_v53 = vadd.f32 1.0, %v683_v25  ;;  %vm652_vm13 = vmor %vm650_vm12, %vm651_vm11 }
 0x13c   : > { %v647_v48 = vsub.f32 1.0, %v646_v37  ;;  %v673_v18 = vadd.f32 1.1283791, %v672_v36 }
 0x13d   : > { %v2179_v3 = vclamps-f32 %v619_v60, 1.0  ;;  %2299 = vrcp.f32 %v684_v53  ;;  %v696_v41 = vand.u32 2147483648, %v684_v53  ;;  %v694_v43 = vand.u32 2147483647, %v684_v53  ;;  %1065 = vperm.xlu2 %2268, %v1057_v10  }
 0x13e   : > { %v648_v46 = vmul.f32 %v2298_v11, %v647_v48  ;;  %vm690_vm0 = vweird.f32 %v684_v53  ;;  %v674_v26 = vmul.f32 %v673_v18, %v3091_v32 }
 0x13f   : > { %v1027_v34 = vadd.f32 1.0, %v2179_v3  ;;  %2199 = vmatmul.msk.f32.gmra.mxu0 %vm1068_vm8, %v3126_v20  ;;  %v697_v55 = vor.u32 1.1754944e-38, %v696_v41  ;;  %vm695_vm2 = vcmp.eq.f32.partialorder %v694_v43, 8.507059e+37 }
 0x140   : > { %v649_v42 = vadd.f32 %v2298_v11, %v648_v46 }
 0x141   : > { %v1043_v35 = vmul.f32 %v1027_v34, %v355_v33 }
 0x142   : > { %v653_v27 = vsel %vm652_vm13, %v2298_v11, %v649_v42 }
 0x143   : > { %1205 = vmatpush.msrb.mxu1 %v1043_v35  ;;  %v658_v50 = vsel %vm655_vm14, %v657_v2, %v653_v27  ;;  %v2300_v38 = vpop.eup %2299 }
 0x144   : > { %2200 = vmatmul.msk.f32.vlgmr.msrb.gmra.mxu1 %vm1068_vm8, %v2861_v24  ;;  %v659_v8 = vmul.f32 %v658_v50, %v634_v58  ;;  %v686_v28 = vmul.f32 %v2300_v38, %v684_v53  ;;  %vm691_vm15 = vweird.f32 %v2300_v38 }
 0x145   : > { %vm692_vm1 = vmor %vm690_vm0, %vm691_vm15  ;;  %2050 = vperm.xlu2 %2268, %v2047_v39  }
 0x146   : > { %v2180_v45 = vclamps-f32 %v659_v8, 1.0  ;;  %v687_v9 = vsub.f32 1.0, %v686_v28 }
 0x148   : > { %v1028_v40 = vadd.f32 1.0, %v2180_v45  ;;  %v688_v13 = vmul.f32 %v2300_v38, %v687_v9 }
 0x14a   : > { %v1044_v16 = vmul.f32 %v1028_v40, %v356_v31  ;;  %v689_v61 = vadd.f32 %v2300_v38, %v688_v13 }
 0x14c   : > { %2201 = vmatmul.msk.f32.gmra.mxu1 %vm1068_vm8, %v3126_v20  ;;  %1228 = vmatpush.msrb.mxu2 %v1044_v16  ;;  %v693_v63 = vsel %vm692_vm1, %v2300_v38, %v689_v61 }
 0x14d   : > { %2202 = vmatmul.msk.f32.vlgmr.msrb.gmra.mxu2 %vm1068_vm8, %v2861_v24  ;;  %v698_v5 = vsel %vm695_vm2, %v697_v55, %v693_v63 }
 0x14e   : > { %v699_v6 = vmul.f32 %v698_v5, %v674_v26 }
 0x150   : > { %v2181_v56 = vclamps-f32 %v699_v6, 1.0 }
 0x152   : > { %v1029_v14 = vadd.f32 1.0, %v2181_v56 }
 0x154   : > { %v1045_v57 = vmul.f32 %v1029_v14, %v357_v62 }
 0x155   : > { %2203 = vmatmul.msk.f32.gmra.mxu2 %vm1068_vm8, %v3126_v20 }
 0x156   : > { %1251 = vmatpush.msrb.mxu3 %v1045_v57 }
 0x157   : > { %2204 = vmatmul.msk.f32.vlgmr.msrb.gmra.mxu3 %vm1068_vm8, %v2861_v24 }
 0x15f   : > { %2205 = vmatmul.msk.f32.gmra.mxu3 %vm1068_vm8, %v3126_v20 }
 0x163   : > { %v1092_v32 = vpop.f32.mrf.mxu0 }
 0x168   : > { %v1115_v7 = vpop.f32.mrf.mxu1 }
 0x17b   : > { %v1138_v4 = vpop.f32.mrf.mxu2 }
 0x185   : > { %v1161_v3 = vpop.f32.mrf.mxu3 }
 0x18f   : > { %v3167_v22 = vpop.permute.xlu2 %1060 }
 0x190   : > { %v3170_v59 = vadd.f32 %v1092_v32, %v3167_v22  ;;  %v3182_v0 = vadd.f32 %v1115_v7, %v3167_v22  ;;  %v3195_v25 = vadd.f32 %v1138_v4, %v3167_v22  ;;  %v3198_v33 = vadd.f32 %v1161_v3, %v3167_v22 }
 0x192   : > { %v3173_v52 = vmul.f32 0.70710677, %v3170_v59  ;;  %v3186_v60 = vmul.f32 0.70710677, %v3182_v0  ;;  %v3201_v48 = vmul.f32 0.70710677, %v3195_v25 }
 0x193   : > { %v3205_v44 = vmul.f32 0.70710677, %v3198_v33 }
 0x194   : > { %v1291_v23 = vmul.f32 %v3173_v52, %v3173_v52  ;;  %v1331_v19 = vmul.f32 %v3186_v60, %v3186_v60  ;;  %v1371_v53 = vmul.f32 %v3201_v48, %v3201_v48 }
 0x195   : > { %v1411_v42 = vmul.f32 %v3205_v44, %v3205_v44 }
 0x196   : > { %v3177_v47 = vmin.f32 %v1291_v23, 16.0  ;;  %v3190_v11 = vmin.f32 %v1331_v19, 16.0  ;;  %v3210_v46 = vmin.f32 %v1371_v53, 16.0 }
 0x197   : > { %v3214_v2 = vpop.permute.xlu2 %1065  ;;  %v3222_v38 = vmin.f32 %v1411_v42, 16.0 }
 0x198   : > { %v1304_v21 = vmul.f32 3.8918573e-05, %v3177_v47  ;;  %v1344_v29 = vmul.f32 3.8918573e-05, %v3190_v11  ;;  %v1293_v35 = vmul.f32 2.1237322e-06, %v3177_v47 }
 0x199   : > { %v1384_v58 = vmul.f32 3.8918573e-05, %v3210_v46  ;;  %v1424_v9 = vmul.f32 3.8918573e-05, %v3222_v38  ;;  %v1333_v63 = vmul.f32 2.1237322e-06, %v3190_v11 }
 0x19a   : > { %v1305_v24 = vadd.f32 0.001143296, %v1304_v21  ;;  %v1345_v34 = vadd.f32 0.001143296, %v1344_v29  ;;  %v1294_v27 = vadd.f32 0.00028619796, %v1293_v35 }
 0x19b   : > { %v1385_v45 = vadd.f32 0.001143296, %v1384_v58  ;;  %v1425_v61 = vadd.f32 0.001143296, %v1424_v9  ;;  %v1334_v23 = vadd.f32 0.00028619796, %v1333_v63 }
 0x19c   : > { %v1306_v51 = vmul.f32 %v1305_v24, %v3177_v47  ;;  %v1346_v54 = vmul.f32 %v1345_v34, %v3190_v11  ;;  %v1295_v28 = vmul.f32 %v1294_v27, %v3177_v47  ;;  %v1373_v24 = vmul.f32 2.1237322e-06, %v3210_v46 }
 0x19d   : > { %v1386_v18 = vmul.f32 %v1385_v45, %v3210_v46  ;;  %v1426_v62 = vmul.f32 %v1425_v61, %v3222_v38  ;;  %v1335_v29 = vmul.f32 %v1334_v23, %v3190_v11 }
 0x19e   : > { %v1307_v12 = vadd.f32 0.014752088, %v1306_v51  ;;  %v1347_v49 = vadd.f32 0.014752088, %v1346_v54  ;;  %v1296_v41 = vadd.f32 0.0036580483, %v1295_v28 }
 0x19f   : > { %v1387_v55 = vadd.f32 0.014752088, %v1386_v18  ;;  %v1427_v7 = vadd.f32 0.014752088, %v1426_v62  ;;  %v1374_v3 = vadd.f32 0.00028619796, %v1373_v24 }
 0x1a0   : > { %v1308_v17 = vmul.f32 %v1307_v12, %v3177_v47  ;;  %v1348_v8 = vmul.f32 %v1347_v49, %v3190_v11  ;;  %v1297_v26 = vmul.f32 %v1296_v41, %v3177_v47  ;;  %v1336_v42 = vadd.f32 0.0036580483, %v1335_v29 }
 0x1a1   : > { %v1388_v14 = vmul.f32 %v1387_v55, %v3210_v46  ;;  %v1428_v53 = vmul.f32 %v1427_v7, %v3222_v38  ;;  %v1375_v27 = vmul.f32 %v1374_v3, %v3210_v46 }
 0x1a2   : > { %v1309_v20 = vadd.f32 0.112945676, %v1308_v17  ;;  %v1349_v40 = vadd.f32 0.112945676, %v1348_v8  ;;  %v1298_v57 = vadd.f32 0.05243302, %v1297_v26  ;;  %v1337_v18 = vmul.f32 %v1336_v42, %v3190_v11 }
 0x1a3   : > { %v1389_v17 = vadd.f32 0.112945676, %v1388_v14  ;;  %v1429_v28 = vadd.f32 0.112945676, %v1428_v53 }
 0x1a4   : > { %v1310_v37 = vmul.f32 %v1309_v20, %v3177_v47  ;;  %v1350_v43 = vmul.f32 %v1349_v40, %v3190_v11  ;;  %v1299_v19 = vmul.f32 %v1298_v57, %v3177_v47  ;;  %v1338_v23 = vadd.f32 0.05243302, %v1337_v18 }
 0x1a5   : > { %v1390_v35 = vmul.f32 %v1389_v17, %v3210_v46  ;;  %v1430_v63 = vmul.f32 %v1429_v28, %v3222_v38 }
 0x1a6   : > { %v1311_v15 = vadd.f32 0.4994258, %v1310_v37  ;;  %v1351_v56 = vadd.f32 0.4994258, %v1350_v43  ;;  %v1413_v37 = vmul.f32 2.1237322e-06, %v3222_v38 }
 0x1a7   : > { %v1300_v49 = vadd.f32 0.18741608, %v1299_v19  ;;  %v1376_v43 = vadd.f32 0.0036580483, %v1375_v27  ;;  %v1431_v17 = vadd.f32 0.4994258, %v1430_v63 }
 0x1a8   : > { %v1095_v1 = vpop.f32.mrf.mxu0  ;;  %v1312_v30 = vmul.f32 %v1311_v15, %v3177_v47  ;;  %v1118_v31 = vpop.f32.mrf.mxu1  ;;  %v1352_v12 = vmul.f32 %v1351_v56, %v3190_v11  ;;  %v1414_v8 = vadd.f32 0.00028619796, %v1413_v37 }
 0x1a9   : > { %v3219_v50 = vadd.f32 %v1095_v1, %v3214_v2  ;;  %v3234_v16 = vadd.f32 %v1118_v31, %v3214_v2  ;;  %v1391_v31 = vadd.f32 0.4994258, %v1390_v35  ;;  %v1301_v9 = vmul.f32 %v1300_v49, %v3177_v47 }
 0x1aa   : > { %v3224_v36 = vadd.f32 1.0, %v1312_v30  ;;  %v3262_v15 = vadd.f32 1.0, %v1352_v12  ;;  %v1415_v61 = vmul.f32 %v1414_v8, %v3222_v38  ;;  %v1377_v24 = vmul.f32 %v1376_v43, %v3210_v46 }
 0x1ab   : > { %v3228_v10 = vmul.f32 0.70710677, %v3219_v50  ;;  %v3242_v5 = vmul.f32 0.70710677, %v3234_v16  ;;  %v1392_v56 = vmul.f32 %v1391_v31, %v3210_v46  ;;  %v1302_v57 = vadd.f32 1.1283791, %v1301_v9 }
 0x1ac   : > { %2301 = vrcp.f32 %v3224_v36  ;;  %v1325_v26 = vand.u32 2147483648, %v3224_v36  ;;  %vm1319_vm3 = vweird.f32 %v3224_v36  ;;  %v1323_v47 = vand.u32 2147483647, %v3224_v36 }
 0x1ad   : > { %v1611_v13 = vmul.f32 %v3228_v10, %v3228_v10  ;;  %v1651_v21 = vmul.f32 %v3242_v5, %v3242_v5  ;;  %2303 = vrcp.f32 %v3262_v15  ;;  %v3306_v3 = vadd.f32 1.0, %v1392_v56 }
 0x1ae   : > { %v1326_v7 = vor.u32 1.1754944e-38, %v1325_v26  ;;  %vm1324_vm5 = vcmp.eq.f32.partialorder %v1323_v47, 8.507059e+37  ;;  %v1378_v53 = vadd.f32 0.05243302, %v1377_v24  ;;  %v3318_v8 = vmul.f32 0.5, %v3170_v59 }
 0x1af   : > { %v3246_v6 = vmin.f32 %v1611_v13, 16.0  ;;  %v3259_v4 = vmin.f32 %v1651_v21, 16.0  ;;  %v1141_v54 = vpop.f32.mrf.mxu2  ;;  %2305 = vrcp.f32 %v3306_v3  ;;  %v3339_v56 = vmul.f32 0.5, %v3198_v33 }
 0x1b0   : > { %v3268_v30 = vadd.f32 %v1141_v54, %v3214_v2  ;;  %vm1359_vm7 = vweird.f32 %v3262_v15  ;;  %vm1399_vm12 = vweird.f32 %v3306_v3 }
 0x1b1   : > { %v1624_v51 = vmul.f32 3.8918573e-05, %v3246_v6  ;;  %v1664_v1 = vmul.f32 3.8918573e-05, %v3259_v4  ;;  %v1613_v19 = vmul.f32 2.1237322e-06, %v3246_v6 }
 0x1b2   : > { %v3244_v39 = vpop.eup %2301  ;;  %v3278_v41 = vmul.f32 0.70710677, %v3268_v30 }
 0x1b3   : > { %v1315_v32 = vmul.f32 %v3244_v39, %v3224_v36  ;;  %v1625_v34 = vadd.f32 0.001143296, %v1624_v51  ;;  %v1665_v40 = vadd.f32 0.001143296, %v1664_v1  ;;  %vm1320_vm8 = vweird.f32 %v3244_v39  ;;  %v3288_v14 = vpop.eup %2303 }
 0x1b4   : > { %vm3292_vm4 = vmor %vm1319_vm3, %vm1320_vm8  ;;  %v1691_v21 = vmul.f32 %v3278_v41, %v3278_v41  ;;  %v1416_v51 = vadd.f32 0.0036580483, %v1415_v61  ;;  %v1355_v29 = vmul.f32 %v3288_v14, %v3262_v15  ;;  %v1303_v1 = vmul.f32 %v1302_v57, %v3173_v52 }
 0x1b5   : > { %v1316_v20 = vsub.f32 1.0, %v1315_v32  ;;  %v1626_v45 = vmul.f32 %v1625_v34, %v3246_v6  ;;  %v1666_v62 = vmul.f32 %v1665_v40, %v3259_v4  ;;  %v1614_v27 = vadd.f32 0.00028619796, %v1613_v19 }
 0x1b6   : > { %v3309_v54 = vmin.f32 %v1691_v21, 16.0  ;;  %v1417_v35 = vmul.f32 %v1416_v51, %v3222_v38  ;;  %v3323_v40 = vmul.f32 0.5, %v3182_v0  ;;  %v1379_v52 = vmul.f32 %v1378_v53, %v3210_v46 }
 0x1b7   : > { %v1317_v58 = vmul.f32 %v3244_v39, %v1316_v20  ;;  %v1627_v55 = vadd.f32 0.014752088, %v1626_v45  ;;  %v1164_v20 = vpop.f32.mrf.mxu3  ;;  %v1667_v37 = vadd.f32 0.014752088, %v1666_v62  ;;  %v1356_v45 = vsub.f32 1.0, %v1355_v29 }
 0x1b8   : > { %v3313_v42 = vadd.f32 %v1164_v20, %v3214_v2  ;;  %v1704_v18 = vmul.f32 3.8918573e-05, %v3309_v54  ;;  %v1418_v43 = vadd.f32 0.05243302, %v1417_v35  ;;  %v1615_v0 = vmul.f32 %v1614_v27, %v3246_v6 }
 0x1b9   : > { %v1318_v13 = vadd.f32 %v3244_v39, %v1317_v58  ;;  %v1628_v12 = vmul.f32 %v1627_v55, %v3246_v6  ;;  %v1432_v58 = vmul.f32 %v1431_v17, %v3222_v38  ;;  %v1668_v28 = vmul.f32 %v1667_v37, %v3259_v4 }
 0x1ba   : > { %v3329_v59 = vmul.f32 0.70710677, %v3313_v42  ;;  %v3332_v55 = vmul.f32 0.5, %v3195_v25  ;;  %v1705_v63 = vadd.f32 0.001143296, %v1704_v18  ;;  %v1357_v47 = vmul.f32 %v3288_v14, %v1356_v45 }
 0x1bb   : > { %v1322_v36 = vsel %vm3292_vm4, %v3244_v39, %v1318_v13  ;;  %v1339_v39 = vmul.f32 %v1338_v23, %v3190_v11  ;;  %v1629_v49 = vadd.f32 0.112945676, %v1628_v12  ;;  %v1184_v13 = vpop.f32.mrf.mxu0  ;;  %v3334_v26 = vadd.f32 1.0, %v1432_v58 }
 0x1bc   : > { %v1327_v34 = vsel %vm1324_vm5, %v1326_v7, %v1322_v36  ;;  %v1669_v62 = vadd.f32 0.112945676, %v1668_v28  ;;  %v3342_v57 = vadd.f32 %v1184_v13, %v3167_v22  ;;  %v3346_v25 = vmul.f32 0.5, %v3219_v50  ;;  %v3349_v36 = vpop.eup %2305 }
 0x1bd   : > { %v1328_v31 = vmul.f32 %v1327_v34, %v1303_v1  ;;  %v1340_v9 = vadd.f32 0.18741608, %v1339_v39  ;;  %v1630_v61 = vmul.f32 %v1629_v49, %v3246_v6  ;;  %v1706_v21 = vmul.f32 %v1705_v63, %v3309_v54 }
 0x1be   : > { %v1380_v24 = vadd.f32 0.18741608, %v1379_v52  ;;  %v1419_v51 = vmul.f32 %v1418_v43, %v3222_v38  ;;  %v1731_v33 = vmul.f32 %v3329_v59, %v3329_v59  ;;  %vm1360_vm6 = vweird.f32 %v3288_v14 }
 0x1bf   : > { %v2206_v32 = vclamps-f32 %v1328_v31, 1.0  ;;  %v1341_v23 = vmul.f32 %v1340_v9, %v3190_v11  ;;  %v1631_v12 = vadd.f32 0.4994258, %v1630_v61  ;;  %2307 = vrcp.f32 %v3334_v26  ;;  %vm3375_vm9 = vmor %vm1359_vm7, %vm1360_vm6 }
 0x1c0   : > { %v1616_v7 = vadd.f32 0.0036580483, %v1615_v0  ;;  %v1707_v11 = vadd.f32 0.014752088, %v1706_v21  ;;  %v1358_v50 = vadd.f32 %v3288_v14, %v1357_v47  ;;  %v1670_v17 = vmul.f32 %v1669_v62, %v3259_v4 }
 0x1c1   : > { %v3358_v19 = vmin.f32 %v1731_v33, 16.0  ;;  %v3361_v20 = vmul.f32 0.70710677, %v3342_v57  ;;  %v1363_v29 = vand.u32 2147483647, %v3262_v15  ;;  %v1365_v37 = vand.u32 2147483648, %v3262_v15 }
 0x1c2   : > { %v1395_v34 = vmul.f32 %v3349_v36, %v3306_v3  ;;  %v1420_v39 = vadd.f32 0.18741608, %v1419_v51  ;;  %v1632_v53 = vmul.f32 %v1631_v12, %v3246_v6  ;;  %v1653_v35 = vmul.f32 2.1237322e-06, %v3259_v4 }
 0x1c3   : > { %v1708_v49 = vmul.f32 %v1707_v11, %v3309_v54  ;;  %v3371_v1 = vadd.f32 1.0, %v2206_v32  ;;  %v1381_v15 = vmul.f32 %v1380_v24, %v3210_v46  ;;  %v1617_v27 = vmul.f32 %v1616_v7, %v3246_v6 }
 0x1c4   : > { %v1744_v45 = vmul.f32 3.8918573e-05, %v3358_v19  ;;  %v1342_v28 = vadd.f32 1.1283791, %v1341_v23  ;;  %v1362_v31 = vsel %vm3375_vm9, %v3288_v14, %v1358_v50  ;;  %v1671_v9 = vadd.f32 0.4994258, %v1670_v17 }
 0x1c5   : > { %v1451_v18 = vmul.f32 %v3361_v20, %v3361_v20  ;;  %v3387_v13 = vpop.eup %2307  ;;  %v1366_v52 = vor.u32 1.1754944e-38, %v1365_v37  ;;  %v1396_v43 = vsub.f32 1.0, %v1395_v34  ;;  %v1709_v61 = vadd.f32 0.112945676, %v1708_v49 }
 0x1c6   : > { %v1745_v0 = vadd.f32 0.001143296, %v1744_v45  ;;  %vm1364_vm10 = vcmp.eq.f32.partialorder %v1363_v29, 8.507059e+37  ;;  %v1421_v46 = vmul.f32 %v1420_v39, %v3222_v38  ;;  %v3390_v63 = vadd.f32 1.0, %v1632_v53  ;;  %v1207_v53 = vpop.f32.mrf.mxu1 }
 0x1c7   : > { %v1654_v47 = vadd.f32 0.00028619796, %v1653_v35  ;;  %v1367_v62 = vsel %vm1364_vm10, %v1366_v52, %v1362_v31  ;;  %v1382_v32 = vadd.f32 1.1283791, %v1381_v15  ;;  %v1618_v23 = vadd.f32 0.05243302, %v1617_v27 }
 0x1c8   : > { %v1746_v14 = vmul.f32 %v1745_v0, %v3358_v19  ;;  %v1343_v21 = vmul.f32 %v1342_v28, %v3186_v60  ;;  %v1435_v24 = vmul.f32 %v3387_v13, %v3334_v26  ;;  %v1672_v51 = vmul.f32 %v1671_v9, %v3259_v4 }
 0x1c9   : > { %v3397_v12 = vmin.f32 %v1451_v18, 16.0  ;;  %v1397_v33 = vmul.f32 %v3349_v36, %v1396_v43  ;;  %v3401_v38 = vmul.f32 0.5, %v3234_v16  ;;  %v1710_v7 = vmul.f32 %v1709_v61, %v3309_v54 }
 0x1ca   : > { %v1747_v11 = vadd.f32 0.014752088, %v1746_v14  ;;  %v1368_v50 = vmul.f32 %v1367_v62, %v1343_v21  ;;  %v1422_v17 = vadd.f32 1.1283791, %v1421_v46  ;;  %2309 = vrcp.f32 %v3390_v63 }
 0x1cb   : > { %v1655_v60 = vmul.f32 %v1654_v47, %v3259_v4  ;;  %v1383_v29 = vmul.f32 %v1382_v32, %v3201_v48  ;;  %v1403_v37 = vand.u32 2147483647, %v3306_v3  ;;  %v1405_v34 = vand.u32 2147483648, %v3306_v3 }
 0x1cc   : > { %v1619_v39 = vmul.f32 %v1618_v23, %v3246_v6  ;;  %v1436_v16 = vsub.f32 1.0, %v1435_v24  ;;  %v3410_v35 = vadd.f32 1.0, %v1672_v51  ;;  %v1693_v49 = vmul.f32 2.1237322e-06, %v3309_v54 }
 0x1cd   : > { %v1464_v58 = vmul.f32 3.8918573e-05, %v3397_v12  ;;  %v1398_v15 = vadd.f32 %v3349_v36, %v1397_v33  ;;  %vm1400_vm11 = vweird.f32 %v3349_v36  ;;  %v1711_v27 = vadd.f32 0.4994258, %v1710_v7 }
 0x1ce   : > { %v1748_v48 = vmul.f32 %v1747_v11, %v3358_v19  ;;  %v2207_v45 = vclamps-f32 %v1368_v50, 1.0  ;;  %v1656_v28 = vadd.f32 0.0036580483, %v1655_v60  ;;  %v3419_v31 = vadd.f32 %v1207_v53, %v3167_v22  ;;  %vm3430_vm14 = vmor %vm1399_vm12, %vm1400_vm11 }
 0x1cf   : > { %vm3421_vm13 = vcmp.eq.f32.partialorder %v1403_v37, 8.507059e+37  ;;  %v1406_v18 = vor.u32 1.1754944e-38, %v1405_v34  ;;  %v3426_v52 = vmul.f32 %v1422_v17, %v3205_v44  ;;  %v1620_v43 = vadd.f32 0.18741608, %v1619_v39 }
 0x1d0   : > { %v3428_v61 = vpop.eup %2309  ;;  %v1437_v3 = vmul.f32 %v3387_v13, %v1436_v16  ;;  %2311 = vrcp.f32 %v3410_v35  ;;  %v1694_v46 = vadd.f32 0.00028619796, %v1693_v49  ;;  %v1465_v47 = vadd.f32 0.001143296, %v1464_v58 }
 0x1d1   : > { %v1402_v62 = vsel %vm3430_vm14, %v3349_v36, %v1398_v15  ;;  %vm1439_vm15 = vweird.f32 %v3334_v26  ;;  %v1712_v44 = vmul.f32 %v1711_v27, %v3309_v54  ;;  %v1749_v32 = vadd.f32 0.112945676, %v1748_v48 }
 0x1d2   : > { %v1932_v23 = vadd.f32 1.0, %v2207_v45  ;;  %v1443_v14 = vand.u32 2147483647, %v3334_v26  ;;  %v1657_v21 = vmul.f32 %v1656_v28, %v3259_v4  ;;  %v3444_v24 = vmul.f32 0.70710677, %v3419_v31 }
 0x1d3   : > { %vm1440_vm0 = vweird.f32 %v3387_v13  ;;  %v1445_v51 = vand.u32 2147483648, %v3334_v26  ;;  %v1621_v33 = vmul.f32 %v1620_v43, %v3246_v6  ;;  %v1635_v36 = vmul.f32 %v3428_v61, %v3390_v63 }
 0x1d4   : > { %v1407_v7 = vsel %vm3421_vm13, %v1406_v18, %v1402_v62  ;;  %v1438_v11 = vadd.f32 %v3387_v13, %v1437_v3  ;;  %v1695_v50 = vmul.f32 %v1694_v46, %v3309_v54  ;;  %v1466_v17 = vmul.f32 %v1465_v47, %v3397_v12  ;;  %vm3476_vm2 = vmor %vm1439_vm15, %vm1440_vm0  ;;  %v1230_v62 = vpop.f32.mrf.mxu2 }
 0x1d5   : > { %v3457_v60 = vmul.f32 0.5, %v3268_v30  ;;  %v3459_v37 = vadd.f32 1.0, %v1712_v44  ;;  %v1733_v34 = vmul.f32 2.1237322e-06, %v3358_v19  ;;  %v1750_v6 = vmul.f32 %v1749_v32, %v3358_v19 }
 0x1d6   : > { %v3463_v39 = vpop.eup %2311  ;;  %v1948_v53 = vmul.f32 %v1932_v23, %v3323_v40  ;;  %vm3466_vm1 = vcmp.eq.f32.partialorder %v1443_v14, 8.507059e+37  ;;  %v1658_v49 = vadd.f32 0.05243302, %v1657_v21  ;;  %v1491_v58 = vmul.f32 %v3444_v24, %v3444_v24 }
 0x1d7   : > { %v1408_v30 = vmul.f32 %v1407_v7, %v1383_v29  ;;  %v1446_v27 = vor.u32 1.1754944e-38, %v1445_v51  ;;  %v1622_v48 = vadd.f32 1.1283791, %v1621_v33  ;;  %v1636_v40 = vsub.f32 1.0, %v1635_v36  ;;  %v3484_v29 = vpop.permute.xlu0 %1967 }
 0x1d8   : > { %v1442_v45 = vsel %vm3476_vm2, %v3387_v13, %v1438_v11  ;;  %v1696_v28 = vadd.f32 0.0036580483, %v1695_v50  ;;  %v1453_v9 = vmul.f32 2.1237322e-06, %v3397_v12  ;;  %v1467_v18 = vadd.f32 0.014752088, %v1466_v17 }
 0x1d9   : > { %v1675_v26 = vmul.f32 %v3463_v39, %v3410_v35  ;;  %2313 = vrcp.f32 %v3459_v37  ;;  %v1734_v43 = vadd.f32 0.00028619796, %v1733_v34  ;;  %v1751_v0 = vadd.f32 0.4994258, %v1750_v6 }
 0x1da   : > { %v3490_v3 = vmul.f32 %v3484_v29, %v1948_v53  ;;  %v1659_v46 = vmul.f32 %v1658_v49, %v3259_v4  ;;  %v3494_v13 = vmul.f32 0.5, %v3313_v42  ;;  %v3496_v47 = vmin.f32 %v1491_v58, 16.0 }
 0x1db   : > { %v2208_v44 = vclamps-f32 %v1408_v30, 1.0  ;;  %v3499_v32 = vmul.f32 %v1622_v48, %v3228_v10  ;;  %v1637_v23 = vmul.f32 %v3428_v61, %v1636_v40  ;;  %v1643_v14 = vand.u32 2147483647, %v3390_v63 }
 0x1dc   : > { %v1447_v21 = vsel %vm3466_vm1, %v1446_v27, %v1442_v45  ;;  %v1697_v51 = vmul.f32 %v1696_v28, %v3309_v54  ;;  %v1454_v33 = vadd.f32 0.00028619796, %v1453_v9  ;;  %v1468_v42 = vmul.f32 %v1467_v18, %v3397_v12 }
 0x1dd   : > { %v1676_v36 = vsub.f32 1.0, %v1675_v26  ;;  %v1735_v7 = vmul.f32 %v1734_v43, %v3358_v19  ;;  %v1752_v11 = vmul.f32 %v1751_v0, %v3358_v19  ;;  %v3510_v10 = vadd.f32 %v1230_v62, %v3167_v22 }
 0x1de   : > { %vm1639_vm8 = vweird.f32 %v3390_v63  ;;  %v1645_v50 = vand.u32 2147483648, %v3390_v63  ;;  %v1660_v17 = vadd.f32 0.18741608, %v1659_v46  ;;  %v1504_v34 = vmul.f32 3.8918573e-05, %v3496_v47 }
 0x1df   : > { %v3515_v6 = vpop.eup %2313  ;;  %v1933_v53 = vadd.f32 1.0, %v2208_v44  ;;  %v3518_v16 = vmul.f32 %v1447_v21, %v3426_v52  ;;  %v1638_v49 = vadd.f32 %v3428_v61, %v1637_v23  ;;  %vm1640_vm3 = vweird.f32 %v3428_v61 }
 0x1e0   : > { %vm3522_vm4 = vcmp.eq.f32.partialorder %v1643_v14, 8.507059e+37  ;;  %v1698_v30 = vadd.f32 0.05243302, %v1697_v51  ;;  %v1455_v15 = vmul.f32 %v1454_v33, %v3397_v12  ;;  %v1469_v27 = vadd.f32 0.112945676, %v1468_v42  ;;  %vm3535_vm5 = vmor %vm1639_vm8, %vm1640_vm3 }
 0x1e1   : > { %v1677_v48 = vmul.f32 %v3463_v39, %v1676_v36  ;;  %v1736_v40 = vadd.f32 0.0036580483, %v1735_v7  ;;  %v3528_v45 = vadd.f32 1.0, %v1752_v11  ;;  %v3531_v52 = vmul.f32 0.70710677, %v3510_v10 }
 0x1e2   : > { %v1646_v9 = vor.u32 1.1754944e-38, %v1645_v50  ;;  %v1661_v18 = vmul.f32 %v1660_v17, %v3259_v4  ;;  %v1715_v26 = vmul.f32 %v3515_v6, %v3459_v37  ;;  %v1505_v43 = vadd.f32 0.001143296, %v1504_v34 }
 0x1e3   : > { %v3543_v0 = vmul.f32 %v1933_v53, %v3332_v55  ;;  %v2209_v46 = vclamps-f32 %v3518_v16, 1.0  ;;  %v1642_v63 = vsel %vm3535_vm5, %v3428_v61, %v1638_v49  ;;  %v3550_v62 = vmul.f32 0.5, %v3342_v57  ;;  %v1253_v61 = vpop.f32.mrf.mxu3 }
 0x1e4   : > { %vm1680_vm6 = vweird.f32 %v3463_v39  ;;  %v1699_v4 = vmul.f32 %v1698_v30, %v3309_v54  ;;  %v1456_v44 = vadd.f32 0.0036580483, %v1455_v15  ;;  %v1470_v23 = vmul.f32 %v1469_v27, %v3397_v12 }
 0x1e5   : > { %v1678_v14 = vadd.f32 %v3463_v39, %v1677_v48  ;;  %v1737_v55 = vmul.f32 %v1736_v40, %v3358_v19  ;;  %2315 = vrcp.f32 %v3528_v45  ;;  %v1531_v21 = vmul.f32 %v3531_v52, %v3531_v52 }
 0x1e6   : > { %v1662_v51 = vadd.f32 1.1283791, %v1661_v18  ;;  %v1685_v57 = vand.u32 2147483648, %v3410_v35  ;;  %v1716_v33 = vsub.f32 1.0, %v1715_v26  ;;  %v1506_v42 = vmul.f32 %v1505_v43, %v3496_v47 }
 0x1e7   : > { %vm1679_vm7 = vweird.f32 %v3410_v35  ;;  %v1683_v36 = vand.u32 2147483647, %v3410_v35  ;;  %v1493_v7 = vmul.f32 2.1237322e-06, %v3496_v47  ;;  %v3565_v11 = vmin.f32 %v1531_v21, 16.0 }
 0x1e8   : > { %v1647_v50 = vsel %vm3522_vm4, %v1646_v9, %v1642_v63  ;;  %vm3571_vm9 = vmor %vm1679_vm7, %vm1680_vm6  ;;  %v1457_v34 = vmul.f32 %v1456_v44, %v3397_v12  ;;  %v1471_v53 = vadd.f32 0.4994258, %v1470_v23  ;;  %v3577_v16 = vadd.f32 %v1253_v61, %v3167_v22 }
 0x1e9   : > { %v1682_v35 = vsel %vm3571_vm9, %v3463_v39, %v1678_v14  ;;  %v1700_v49 = vadd.f32 0.18741608, %v1699_v4  ;;  %v1738_v30 = vadd.f32 0.05243302, %v1737_v55  ;;  %v1544_v58 = vmul.f32 3.8918573e-05, %v3565_v11 }
 0x1ea   : > { %v1663_v15 = vmul.f32 %v1662_v51, %v3242_v5  ;;  %v1686_v27 = vor.u32 1.1754944e-38, %v1685_v57  ;;  %v1717_v48 = vmul.f32 %v3515_v6, %v1716_v33  ;;  %v1507_v40 = vadd.f32 0.014752088, %v1506_v42 }
 0x1eb   : > { %v3585_v28 = vpop.eup %2315  ;;  %v1648_v9 = vmul.f32 %v1647_v50, %v3499_v32  ;;  %vm1684_vm10 = vcmp.eq.f32.partialorder %v1683_v36, 8.507059e+37  ;;  %v1494_v22 = vadd.f32 0.00028619796, %v1493_v7  ;;  %v1545_v18 = vadd.f32 0.001143296, %v1544_v58 }
 0x1ec   : > { %v1687_v26 = vsel %vm1684_vm10, %v1686_v27, %v1682_v35  ;;  %v1458_v43 = vadd.f32 0.05243302, %v1457_v34  ;;  %v1472_v39 = vmul.f32 %v1471_v53, %v3397_v12  ;;  %v3590_v63 = vmul.f32 0.70710677, %v3577_v16  ;;  %v1187_v53 = vpop.f32.mrf.mxu0 }
 0x1ed   : > { %v1701_v5 = vmul.f32 %v1700_v49, %v3309_v54  ;;  %v1723_v4 = vand.u32 2147483647, %v3459_v37  ;;  %v1739_v44 = vmul.f32 %v1738_v30, %v3358_v19  ;;  %v1546_v23 = vmul.f32 %v1545_v18, %v3565_v11 }
 0x1ee   : > { %v1718_v32 = vadd.f32 %v3515_v6, %v1717_v48  ;;  %vm1720_vm11 = vweird.f32 %v3515_v6  ;;  %v1755_v14 = vmul.f32 %v3585_v28, %v3528_v45  ;;  %v1508_v55 = vmul.f32 %v1507_v40, %v3496_v47 }
 0x1ef   : > { %v1688_v21 = vmul.f32 %v1687_v26, %v1663_v15  ;;  %v1725_v61 = vand.u32 2147483648, %v3459_v37  ;;  %v1495_v54 = vmul.f32 %v1494_v22, %v3496_v47  ;;  %v1547_v51 = vadd.f32 0.014752088, %v1546_v23 }
 0x1f0   : > { %vm1719_vm12 = vweird.f32 %v3459_v37  ;;  %v1459_v57 = vmul.f32 %v1458_v43, %v3397_v12  ;;  %v3605_v33 = vadd.f32 1.0, %v1472_v39  ;;  %v1571_v42 = vmul.f32 %v3590_v63, %v3590_v63 }
 0x1f1   : > { %v1934_v36 = vadd.f32 1.0, %v2209_v46  ;;  %v2214_v7 = vclamps-f32 %v1648_v9, 1.0  ;;  %v1702_v50 = vadd.f32 1.1283791, %v1701_v5  ;;  %vm3609_vm13 = vmor %vm1719_vm12, %vm1720_vm11  ;;  %v1740_v34 = vadd.f32 0.18741608, %v1739_v44 }
 0x1f2   : > { %v1722_v37 = vsel %vm3609_vm13, %v3515_v6, %v1718_v32  ;;  %v1756_v35 = vsub.f32 1.0, %v1755_v14  ;;  %v1509_v49 = vadd.f32 0.112945676, %v1508_v55  ;;  %v1548_v30 = vmul.f32 %v1547_v51, %v3565_v11 }
 0x1f3   : > { %v2215_v58 = vclamps-f32 %v1688_v21, 1.0  ;;  %vm1724_vm14 = vcmp.eq.f32.partialorder %v1723_v4, 8.507059e+37  ;;  %v1726_v15 = vor.u32 1.1754944e-38, %v1725_v61  ;;  %v1496_v46 = vadd.f32 0.0036580483, %v1495_v54 }
 0x1f4   : > { %v1460_v27 = vadd.f32 0.18741608, %v1459_v57  ;;  %2317 = vrcp.f32 %v3605_v33  ;;  %v3618_v48 = vmin.f32 %v1571_v42, 16.0  ;;  %v3621_v40 = vadd.f32 %v1187_v53, %v3214_v2  ;;  %v1210_v53 = vpop.f32.mrf.mxu1 }
 0x1f5   : > { %v3625_v9 = vmul.f32 %v3484_v29, %v3543_v0  ;;  %v1727_v6 = vsel %vm1724_vm14, %v1726_v15, %v1722_v37  ;;  %v1741_v22 = vmul.f32 %v1740_v34, %v3358_v19  ;;  %v1533_v18 = vmul.f32 2.1237322e-06, %v3565_v11 }
 0x1f6   : > { %v1703_v26 = vmul.f32 %v1702_v50, %v3278_v41  ;;  %v1757_v43 = vmul.f32 %v3585_v28, %v1756_v35  ;;  %v1510_v39 = vmul.f32 %v1509_v49, %v3496_v47  ;;  %v1549_v5 = vadd.f32 0.112945676, %v1548_v30 }
 0x1f7   : > { %v3632_v4 = vadd.f32 1.0, %v2214_v7  ;;  %v1940_v44 = vadd.f32 1.0, %v2215_v58  ;;  %v3635_v23 = vmul.f32 0.5, %v3419_v31  ;;  %v1497_v0 = vmul.f32 %v1496_v46, %v3496_v47  ;;  %v1233_v46 = vpop.f32.mrf.mxu2 }
 0x1f8   : > { %v1728_v32 = vmul.f32 %v1727_v6, %v1703_v26  ;;  %v1461_v19 = vmul.f32 %v1460_v27, %v3397_v12  ;;  %v1584_v14 = vmul.f32 3.8918573e-05, %v3618_v48  ;;  %v3641_v41 = vmul.f32 0.70710677, %v3621_v40 }
 0x1f9   : > { %v3644_v55 = vmul.f32 %v1934_v36, %v3339_v56  ;;  %v1742_v21 = vadd.f32 1.1283791, %v1741_v22  ;;  %v1763_v61 = vand.u32 2147483647, %v3528_v45  ;;  %v1534_v54 = vadd.f32 0.00028619796, %v1533_v18 }
 0x1fa   : > { %v3647_v51 = vpop.eup %2317  ;;  %v1758_v31 = vadd.f32 %v3585_v28, %v1757_v43  ;;  %vm1760_vm15 = vweird.f32 %v3585_v28  ;;  %v1511_v57 = vadd.f32 0.4994258, %v1510_v39  ;;  %v1550_v12 = vmul.f32 %v1549_v5, %v3565_v11 }
 0x1fb   : > { %v3653_v42 = vmul.f32 %v1940_v44, %v3401_v38  ;;  %vm1759_vm0 = vweird.f32 %v3528_v45  ;;  %v1765_v56 = vand.u32 2147483648, %v3528_v45  ;;  %v1498_v36 = vadd.f32 0.05243302, %v1497_v0 }
 0x1fc   : > { %v2216_v7 = vclamps-f32 %v1728_v32, 1.0  ;;  %v1462_v50 = vadd.f32 1.1283791, %v1461_v19  ;;  %v1585_v17 = vadd.f32 0.001143296, %v1584_v14  ;;  %v1771_v34 = vmul.f32 %v3641_v41, %v3641_v41  ;;  %vm3660_vm1 = vmor %vm1759_vm0, %vm1760_vm15 }
 0x1fd   : > { %v1743_v37 = vmul.f32 %v1742_v21, %v3329_v59  ;;  %vm3664_vm2 = vcmp.eq.f32.partialorder %v1763_v61, 8.507059e+37  ;;  %v1475_v45 = vmul.f32 %v3647_v51, %v3605_v33  ;;  %v1535_v49 = vmul.f32 %v1534_v54, %v3565_v11 }
 0x1fe   : > { %v1762_v30 = vsel %vm3660_vm1, %v3585_v28, %v1758_v31  ;;  %v1512_v58 = vmul.f32 %v1511_v57, %v3496_v47  ;;  %v1551_v59 = vadd.f32 0.4994258, %v1550_v12  ;;  %v3675_v15 = vmin.f32 %v1771_v34, 16.0 }
 0x1ff   : > { %v1766_v27 = vor.u32 1.1754944e-38, %v1765_v56  ;;  %v1499_v6 = vmul.f32 %v1498_v36, %v3496_v47  ;;  %v3679_v22 = vmul.f32 0.5, %v3510_v10  ;;  %v3682_v18 = vadd.f32 %v1210_v53, %v3214_v2 }
 0x200   : > { %v1941_v26 = vadd.f32 1.0, %v2216_v7  ;;  %v3685_v43 = vmul.f32 %v1462_v50, %v3361_v20  ;;  %v1483_v28 = vand.u32 2147483647, %v3605_v33  ;;  %v1586_v39 = vmul.f32 %v1585_v17, %v3618_v48 }
 0x201   : > { %v1767_v5 = vsel %vm3664_vm2, %v1766_v27, %v1762_v30  ;;  %v1476_v44 = vsub.f32 1.0, %v1475_v45  ;;  %v1536_v0 = vadd.f32 0.0036580483, %v1535_v49  ;;  %v3692_v32 = vadd.f32 %v1233_v46, %v3214_v2 }
 0x202   : > { %v3694_v10 = vadd.f32 1.0, %v1512_v58  ;;  %v1552_v19 = vmul.f32 %v1551_v59, %v3565_v11  ;;  %v1573_v14 = vmul.f32 2.1237322e-06, %v3618_v48  ;;  %v1784_v20 = vmul.f32 3.8918573e-05, %v3675_v15 }
 0x203   : > { %vm1479_vm8 = vweird.f32 %v3605_v33  ;;  %v1485_v21 = vand.u32 2147483648, %v3605_v33  ;;  %v1500_v61 = vadd.f32 0.18741608, %v1499_v6  ;;  %v3702_v54 = vmul.f32 0.70710677, %v3682_v18 }
 0x204   : > { %v1768_v31 = vmul.f32 %v1767_v5, %v1743_v37  ;;  %v1587_v57 = vadd.f32 0.014752088, %v1586_v39  ;;  %v1773_v12 = vmul.f32 2.1237322e-06, %v3675_v15  ;;  %v1785_v56 = vadd.f32 0.001143296, %v1784_v20 }
 0x205   : > { %v1477_v36 = vmul.f32 %v3647_v51, %v1476_v44  ;;  %v1537_v7 = vmul.f32 %v1536_v0, %v3565_v11  ;;  %v1811_v50 = vmul.f32 %v3702_v54, %v3702_v54  ;;  %v3710_v17 = vmul.f32 0.70710677, %v3692_v32 }
 0x206   : > { %v1957_v34 = vmul.f32 %v1941_v26, %v3457_v60  ;;  %2319 = vrcp.f32 %v3694_v10  ;;  %v3714_v53 = vadd.f32 1.0, %v1552_v19  ;;  %v1574_v37 = vadd.f32 0.00028619796, %v1573_v14  ;;  %v3726_v26 = vpop.permute.xlu1 %1972 }
 0x207   : > { %vm1480_vm3 = vweird.f32 %v3647_v51  ;;  %v1501_v35 = vmul.f32 %v1500_v61, %v3496_v47  ;;  %v1786_v38 = vmul.f32 %v1785_v56, %v3675_v15  ;;  %v3719_v45 = vmin.f32 %v1811_v50, 16.0 }
 0x208   : > { %v2217_v49 = vclamps-f32 %v1768_v31, 1.0  ;;  %v1588_v30 = vmul.f32 %v1587_v57, %v3618_v48  ;;  %v1774_v58 = vadd.f32 0.00028619796, %v1773_v12  ;;  %v1851_v60 = vmul.f32 %v3710_v17, %v3710_v17  ;;  %vm3746_vm5 = vmor %vm1479_vm8, %vm1480_vm3 }
 0x209   : > { %v1478_v59 = vadd.f32 %v3647_v51, %v1477_v36  ;;  %v1538_v46 = vadd.f32 0.05243302, %v1537_v7  ;;  %v1787_v27 = vadd.f32 0.014752088, %v1786_v38  ;;  %v1813_v6 = vmul.f32 2.1237322e-06, %v3719_v45 }
 0x20a   : > { %2321 = vrcp.f32 %v3714_v53  ;;  %v1575_v47 = vmul.f32 %v1574_v37, %v3618_v48  ;;  %v1824_v39 = vmul.f32 3.8918573e-05, %v3719_v45  ;;  %v3731_v5 = vmin.f32 %v1851_v60, 16.0 }
 0x20b   : > { %v3734_v44 = vmul.f32 %v3726_v26, %v1957_v34  ;;  %vm3736_vm4 = vcmp.eq.f32.partialorder %v1483_v28, 8.507059e+37  ;;  %v1486_v19 = vor.u32 1.1754944e-38, %v1485_v21  ;;  %v1502_v14 = vadd.f32 1.1283791, %v1501_v35 }
 0x20c   : > { %v3740_v20 = vpop.eup %2319  ;;  %v1942_v61 = vadd.f32 1.0, %v2217_v49  ;;  %v1589_v57 = vadd.f32 0.112945676, %v1588_v30  ;;  %v1775_v12 = vmul.f32 %v1774_v58, %v3675_v15  ;;  %v1788_v28 = vmul.f32 %v1787_v27, %v3675_v15 }
 0x20d   : > { %v1482_v21 = vsel %vm3746_vm5, %v3647_v51, %v1478_v59  ;;  %v3756_v56 = vmul.f32 0.5, %v3621_v40  ;;  %v1814_v36 = vadd.f32 0.00028619796, %v1813_v6  ;;  %v1825_v7 = vadd.f32 0.001143296, %v1824_v39 }
 0x20e   : > { %v1539_v33 = vmul.f32 %v1538_v46, %v3565_v11  ;;  %v1576_v50 = vadd.f32 0.0036580483, %v1575_v47  ;;  %v1789_v34 = vadd.f32 0.112945676, %v1788_v28  ;;  %v1853_v37 = vmul.f32 2.1237322e-06, %v3731_v5 }
 0x20f   : > { %v1515_v35 = vmul.f32 %v3740_v20, %v3694_v10  ;;  %v1815_v38 = vmul.f32 %v1814_v36, %v3719_v45  ;;  %v1826_v49 = vmul.f32 %v1825_v7, %v3719_v45  ;;  %v1864_v51 = vmul.f32 3.8918573e-05, %v3731_v5 }
 0x210   : > { %v3765_v30 = vpop.eup %2321  ;;  %v1590_v40 = vmul.f32 %v1589_v57, %v3618_v48  ;;  %v1776_v58 = vadd.f32 0.0036580483, %v1775_v12  ;;  %v1790_v60 = vmul.f32 %v1789_v34, %v3675_v15  ;;  %v1854_v59 = vadd.f32 0.00028619796, %v1853_v37 }
 0x211   : > { %v3770_v46 = vmul.f32 %v1502_v14, %v3444_v24  ;;  %v1816_v27 = vadd.f32 0.0036580483, %v1815_v38  ;;  %v1827_v6 = vadd.f32 0.014752088, %v1826_v49  ;;  %v1865_v47 = vadd.f32 0.001143296, %v1864_v51  ;;  %v1256_v51 = vpop.f32.mrf.mxu3 }
 0x212   : > { %v3773_v39 = vmul.f32 %v1942_v61, %v3494_v13  ;;  %v1487_v31 = vsel %vm3736_vm4, %v1486_v19, %v1482_v21  ;;  %v1523_v28 = vand.u32 2147483647, %v3694_v10  ;;  %v1540_v36 = vadd.f32 0.18741608, %v1539_v33 }
 0x213   : > { %v1555_v57 = vmul.f32 %v3765_v30, %v3714_v53  ;;  %v1791_v12 = vadd.f32 0.4994258, %v1790_v60  ;;  %v1828_v7 = vmul.f32 %v1827_v6, %v3719_v45  ;;  %v1855_v24 = vmul.f32 %v1854_v59, %v3731_v5 }
 0x214   : > { %v1516_v14 = vsub.f32 1.0, %v1515_v35  ;;  %v1591_v34 = vadd.f32 0.4994258, %v1590_v40  ;;  %v1777_v37 = vmul.f32 %v1776_v58, %v3675_v15  ;;  %v1866_v13 = vmul.f32 %v1865_v47, %v3731_v5 }
 0x215   : > { %v1577_v0 = vmul.f32 %v1576_v50, %v3618_v48  ;;  %v1792_v19 = vmul.f32 %v1791_v12, %v3675_v15  ;;  %v1817_v61 = vmul.f32 %v1816_v27, %v3719_v45  ;;  %v1829_v21 = vadd.f32 0.112945676, %v1828_v7 }
 0x216   : > { %v3788_v33 = vmul.f32 %v1487_v31, %v3685_v43  ;;  %vm1519_vm6 = vweird.f32 %v3694_v10  ;;  %v1525_v38 = vand.u32 2147483648, %v3694_v10  ;;  %v1541_v35 = vmul.f32 %v1540_v36, %v3565_v11 }
 0x217   : > { %v1867_v49 = vadd.f32 0.014752088, %v1866_v13  ;;  %v1556_v40 = vsub.f32 1.0, %v1555_v57  ;;  %v3793_v58 = vadd.f32 1.0, %v1792_v19  ;;  %v1830_v50 = vmul.f32 %v1829_v21, %v3719_v45 }
 0x218   : > { %v1856_v60 = vadd.f32 0.0036580483, %v1855_v24  ;;  %v1517_v59 = vmul.f32 %v3740_v20, %v1516_v14  ;;  %v1592_v27 = vmul.f32 %v1591_v34, %v3618_v48  ;;  %v1778_v43 = vadd.f32 0.05243302, %v1777_v37 }
 0x219   : > { %v1868_v6 = vmul.f32 %v1867_v49, %v3731_v5  ;;  %v1578_v47 = vadd.f32 0.05243302, %v1577_v0  ;;  %2323 = vrcp.f32 %v3793_v58  ;;  %v1818_v31 = vadd.f32 0.05243302, %v1817_v61 }
 0x21a   : > { %v3801_v11 = vadd.f32 %v1256_v51, %v3214_v2  ;;  %v2210_v36 = vclamps-f32 %v3788_v33, 1.0  ;;  %vm1520_vm7 = vweird.f32 %v3740_v20  ;;  %vm3805_vm9 = vcmp.eq.f32.partialorder %v1523_v28, 8.507059e+37 }
 0x21b   : > { %v1526_v12 = vor.u32 1.1754944e-38, %v1525_v38  ;;  %v1831_v7 = vadd.f32 0.4994258, %v1830_v50  ;;  %v1542_v24 = vadd.f32 1.1283791, %v1541_v35  ;;  %v1557_v14 = vmul.f32 %v3765_v30, %v1556_v40  ;;  %vm3833_vm11 = vmor %vm1519_vm6, %vm1520_vm7 }
 0x21c   : > { %v1857_v34 = vmul.f32 %v1856_v60, %v3731_v5  ;;  %v1869_v37 = vadd.f32 0.112945676, %v1868_v6  ;;  %v1518_v13 = vadd.f32 %v3740_v20, %v1517_v59  ;;  %v3812_v2 = vadd.f32 1.0, %v1592_v27 }
 0x21d   : > { %v1779_v0 = vmul.f32 %v1778_v43, %v3675_v15  ;;  %v1832_v19 = vmul.f32 %v1831_v7, %v3719_v45  ;;  %v3817_v28 = vmul.f32 %v1578_v47, %v3618_v48  ;;  %v1819_v61 = vmul.f32 %v1818_v31, %v3719_v45 }
 0x21e   : > { %v1870_v21 = vmul.f32 %v1869_v37, %v3731_v5  ;;  %v3822_v38 = vmul.f32 0.70710677, %v3801_v11  ;;  %vm1560_vm10 = vweird.f32 %v3765_v30  ;;  %v1563_v35 = vand.u32 2147483647, %v3714_v53 }
 0x21f   : > { %v1565_v49 = vand.u32 2147483648, %v3714_v53  ;;  %v3827_v51 = vadd.f32 1.0, %v1832_v19  ;;  %v2324_v40 = vpop.eup %2323  ;;  %v1558_v60 = vadd.f32 %v3765_v30, %v1557_v14  ;;  %v1858_v59 = vadd.f32 0.05243302, %v1857_v34 }
 0x220   : > { %v1871_v27 = vadd.f32 0.4994258, %v1870_v21  ;;  %v1891_v43 = vmul.f32 %v3822_v38, %v3822_v38  ;;  %v1522_v6 = vsel %vm3833_vm11, %v3740_v20, %v1518_v13  ;;  %2325 = vrcp.f32 %v3812_v2 }
 0x221   : > { %v1780_v47 = vadd.f32 0.18741608, %v1779_v0  ;;  %v1795_v10 = vmul.f32 %v2324_v40, %v3793_v58  ;;  %v1543_v31 = vmul.f32 %v1542_v24, %v3531_v52  ;;  %vm1559_vm12 = vweird.f32 %v3714_v53 }
 0x222   : > { %v1820_v7 = vadd.f32 0.18741608, %v1819_v61  ;;  %2327 = vrcp.f32 %v3827_v51  ;;  %vm3850_vm13 = vmor %vm1559_vm12, %vm1560_vm10  ;;  %vm3854_vm14 = vcmp.eq.f32.partialorder %v1563_v35, 8.507059e+37  ;;  %v1566_v34 = vor.u32 1.1754944e-38, %v1565_v49 }
 0x223   : > { %v1796_v37 = vsub.f32 1.0, %v1795_v10  ;;  %v1872_v13 = vmul.f32 %v1871_v27, %v3731_v5  ;;  %v1527_v52 = vsel %vm3805_vm9, %v1526_v12, %v1522_v6  ;;  %v1562_v53 = vsel %vm3850_vm13, %v3765_v30, %v1558_v60 }
 0x224   : > { %v1859_v24 = vmul.f32 %v1858_v59, %v3731_v5  ;;  %v3865_v0 = vmin.f32 %v1891_v43, 16.0  ;;  %v1781_v19 = vmul.f32 %v1780_v47, %v3675_v15  ;;  %vm1800_vm15 = vweird.f32 %v2324_v40 }
 0x225   : > { %v1797_v61 = vmul.f32 %v2324_v40, %v1796_v37  ;;  %v3868_v21 = vadd.f32 1.0, %v1872_v13  ;;  %v1805_v35 = vand.u32 2147483648, %v3793_v58  ;;  %v1821_v49 = vmul.f32 %v1820_v7, %v3719_v45 }
 0x226   : > { %v1893_v57 = vmul.f32 2.1237322e-06, %v3865_v0  ;;  %v1904_v12 = vmul.f32 3.8918573e-05, %v3865_v0  ;;  %v3874_v50 = vpop.eup %2325  ;;  %vm1799_vm0 = vweird.f32 %v3793_v58  ;;  %v1803_v60 = vand.u32 2147483647, %v3793_v58 }
 0x227   : > { %v1798_v30 = vadd.f32 %v2324_v40, %v1797_v61  ;;  %2329 = vrcp.f32 %v3868_v21  ;;  %v3880_v59 = vmul.f32 %v1527_v52, %v3770_v46  ;;  %v1567_v45 = vsel %vm3854_vm14, %v1566_v34, %v1562_v53  ;;  %vm3884_vm1 = vmor %vm1799_vm0, %vm1800_vm15 }
 0x228   : > { %v2328_v15 = vpop.eup %2327  ;;  %v1860_v43 = vadd.f32 0.18741608, %v1859_v24  ;;  %v1894_v6 = vadd.f32 0.00028619796, %v1893_v57  ;;  %v1782_v47 = vadd.f32 1.1283791, %v1781_v19  ;;  %v1595_v46 = vmul.f32 %v3874_v50, %v3812_v2 }
 0x229   : > { %v1802_v10 = vsel %vm3884_vm1, %v2324_v40, %v1798_v30  ;;  %v1835_v58 = vmul.f32 %v2328_v15, %v3827_v51  ;;  %v1905_v7 = vadd.f32 0.001143296, %v1904_v12  ;;  %v1806_v14 = vor.u32 1.1754944e-38, %v1805_v35 }
 0x22a   : > { %v1822_v37 = vadd.f32 1.1283791, %v1821_v49  ;;  %v1895_v20 = vmul.f32 %v1894_v6, %v3865_v0  ;;  %v3894_v34 = vmul.f32 %v1567_v45, %v1543_v31  ;;  %vm1804_vm2 = vcmp.eq.f32.partialorder %v1803_v60, 8.507059e+37 }
 0x22b   : > { %v1836_v13 = vsub.f32 1.0, %v1835_v58  ;;  %v1906_v52 = vmul.f32 %v1905_v7, %v3865_v0  ;;  %v1807_v53 = vsel %vm1804_vm2, %v1806_v14, %v1802_v10  ;;  %v1843_v24 = vand.u32 2147483647, %v3827_v51 }
 0x22c   : > { %v1845_v40 = vand.u32 2147483648, %v3827_v51  ;;  %v1861_v19 = vmul.f32 %v1860_v43, %v3731_v5  ;;  %v1783_v57 = vmul.f32 %v1782_v47, %v3641_v41  ;;  %vm1840_vm8 = vweird.f32 %v2328_v15 }
 0x22d   : > { %v2330_v61 = vpop.eup %2329  ;;  %v1837_v35 = vmul.f32 %v2328_v15, %v1836_v13  ;;  %v1907_v49 = vadd.f32 0.014752088, %v1906_v52  ;;  %v1596_v12 = vsub.f32 1.0, %v1595_v46  ;;  %v1823_v31 = vmul.f32 %v1822_v37, %v3702_v54 }
 0x22e   : > { %v1875_v30 = vmul.f32 %v2330_v61, %v3868_v21  ;;  %v1896_v60 = vadd.f32 0.0036580483, %v1895_v20  ;;  %v1808_v45 = vmul.f32 %v1807_v53, %v1783_v57  ;;  %vm1839_vm3 = vweird.f32 %v3827_v51 }
 0x22f   : > { %v1838_v27 = vadd.f32 %v2328_v15, %v1837_v35  ;;  %v1908_v6 = vmul.f32 %v1907_v49, %v3865_v0  ;;  %vm1841_vm4 = vmor %vm1839_vm3, %vm1840_vm8  ;;  %vm1844_vm5 = vcmp.eq.f32.partialorder %v1843_v24, 8.507059e+37  ;;  %v1846_v5 = vor.u32 1.1754944e-38, %v1845_v40 }
 0x230   : > { %v1862_v43 = vadd.f32 1.1283791, %v1861_v19  ;;  %v1876_v41 = vsub.f32 1.0, %v1875_v30  ;;  %v1883_v10 = vand.u32 2147483647, %v3868_v21  ;;  %v1885_v58 = vand.u32 2147483648, %v3868_v21 }
 0x231   : > { %v1842_v47 = vsel %vm1841_vm4, %v2328_v15, %v1838_v27  ;;  %v1909_v54 = vadd.f32 0.112945676, %v1908_v6  ;;  %vm1880_vm6 = vweird.f32 %v2330_v61  ;;  %v1897_v14 = vmul.f32 %v1896_v60, %v3865_v0 }
 0x232   : > { %v1847_v7 = vsel %vm1844_vm5, %v1846_v5, %v1842_v47  ;;  %v1877_v46 = vmul.f32 %v2330_v61, %v1876_v41  ;;  %v1580_v51 = vadd.f32 0.18741608, %v3817_v28  ;;  %v2218_v37 = vclamps-f32 %v1808_v45, 1.0 }
 0x233   : > { %v1848_v20 = vmul.f32 %v1847_v7, %v1823_v31  ;;  %v1910_v13 = vmul.f32 %v1909_v54, %v3865_v0  ;;  %v2211_v52 = vclamps-f32 %v3880_v59, 1.0  ;;  %v2212_v15 = vclamps-f32 %v3894_v34, 1.0 }
 0x234   : > { %v1878_v53 = vadd.f32 %v2330_v61, %v1877_v46  ;;  %vm1879_vm7 = vweird.f32 %v3868_v21  ;;  %v1597_v24 = vmul.f32 %v3874_v50, %v1596_v12  ;;  %v1886_v19 = vor.u32 1.1754944e-38, %v1885_v58 }
 0x235   : > { %v2219_v40 = vclamps-f32 %v1848_v20, 1.0  ;;  %vm1881_vm9 = vmor %vm1879_vm7, %vm1880_vm6  ;;  %v1911_v57 = vadd.f32 0.4994258, %v1910_v13  ;;  %v1863_v35 = vmul.f32 %v1862_v43, %v3710_v17  ;;  %vm1884_vm10 = vcmp.eq.f32.partialorder %v1883_v10, 8.507059e+37 }
 0x236   : > { %v1882_v28 = vsel %vm1881_vm9, %v2330_v61, %v1878_v53  ;;  %v1898_v49 = vadd.f32 0.05243302, %v1897_v14  ;;  %v1935_v31 = vadd.f32 1.0, %v2210_v36  ;;  %v1943_v59 = vadd.f32 1.0, %v2218_v37 }
 0x237   : > { %v1887_v30 = vsel %vm1884_vm10, %v1886_v19, %v1882_v28  ;;  %v1912_v34 = vmul.f32 %v1911_v57, %v3865_v0  ;;  %v1581_v21 = vmul.f32 %v1580_v51, %v3618_v48  ;;  %v1272_v12 = vmul.f32 0.5, %v3682_v18 }
 0x238   : > { %v1944_v60 = vadd.f32 1.0, %v2219_v40  ;;  %v1888_v45 = vmul.f32 %v1887_v30, %v1863_v35  ;;  %v1936_v27 = vadd.f32 1.0, %v2211_v52  ;;  %v1598_v6 = vadd.f32 %v3874_v50, %v1597_v24 }
 0x239   : > { %vm1600_vm11 = vweird.f32 %v3874_v50  ;;  %v3922_v17 = vadd.f32 1.0, %v1912_v34  ;;  %v1937_v61 = vadd.f32 1.0, %v2212_v15  ;;  %v1605_v33 = vand.u32 2147483648, %v3812_v2 }
 0x23a   : > { %v2220_v36 = vclamps-f32 %v1888_v45, 1.0  ;;  %v1899_v5 = vmul.f32 %v1898_v49, %v3865_v0  ;;  %vm1599_vm12 = vweird.f32 %v3812_v2  ;;  %v1603_v48 = vand.u32 2147483647, %v3812_v2 }
 0x23b   : > { %v1959_v18 = vmul.f32 %v1943_v59, %v3756_v56  ;;  %2331 = vrcp.f32 %v3922_v17  ;;  %v1986_v43 = vmul.f32 %v3726_v26, %v3773_v39  ;;  %vm3932_vm13 = vmor %vm1599_vm12, %vm1600_vm11  ;;  %v1960_v47 = vmul.f32 %v1944_v60, %v1272_v12 }
 0x23c   : > { %v1273_v10 = vmul.f32 0.5, %v3692_v32  ;;  %v1945_v58 = vadd.f32 1.0, %v2220_v36  ;;  %v1951_v54 = vmul.f32 %v1935_v31, %v3550_v62  ;;  %v1952_v7 = vmul.f32 %v1936_v27, %v3635_v23 }
 0x23d   : > { %v1582_v2 = vadd.f32 1.1283791, %v1581_v21  ;;  %v1602_v56 = vsel %vm3932_vm13, %v3874_v50, %v1598_v6  ;;  %v1953_v46 = vmul.f32 %v1937_v61, %v3679_v22  ;;  %v1606_v39 = vor.u32 1.1754944e-38, %v1605_v33 }
 0x23e   : > { %v1961_v14 = vmul.f32 %v1945_v58, %v1273_v10  ;;  %v1900_v51 = vadd.f32 0.18741608, %v1899_v5  ;;  %v1978_v37 = vmul.f32 %v3484_v29, %v3644_v55  ;;  %v1984_v32 = vmul.f32 %v3726_v26, %v3653_v42 }
 0x23f   : > { %vm1604_vm14 = vcmp.eq.f32.partialorder %v1603_v48, 8.507059e+37  ;;  %v1987_v62 = vmul.f32 %v3726_v26, %v1959_v18  ;;  %v1955_v23 = vmul.f32 %v3632_v4, %v3346_v25  ;;  %v1988_v50 = vmul.f32 %v3726_v26, %v1960_v47 }
 0x240   : > { %v1607_v20 = vsel %vm1604_vm14, %v1606_v39, %v1602_v56  ;;  %v1989_v22 = vmul.f32 %v3726_v26, %v1961_v14  ;;  %v2005_v52 = vadd.f32 %v3734_v44, %v3625_v9  ;;  %v2012_v15 = vadd.f32 %v1986_v43, %v1978_v37 }
 0x241   : > { %v2332_v13 = vpop.eup %2331  ;;  %v1979_v55 = vmul.f32 %v3484_v29, %v1951_v54  ;;  %v1583_v42 = vmul.f32 %v1582_v2, %v3590_v63  ;;  %v1980_v53 = vmul.f32 %v3484_v29, %v1952_v7  ;;  %v1981_v24 = vmul.f32 %v3484_v29, %v1953_v46 }
 0x242   : > { %v1901_v25 = vmul.f32 %v1900_v51, %v3865_v0  ;;  %v1915_v4 = vmul.f32 %v2332_v13, %v3922_v17  ;;  %v1947_v40 = vmul.f32 %v3371_v1, %v3318_v8  ;;  %v1998_v19 = vadd.f32 %v1984_v32, %v3490_v3 }
 0x243   : > { %v1608_v57 = vmul.f32 %v1607_v20, %v1583_v42  ;;  %v2019_v9 = vadd.f32 %v1987_v62, %v1979_v55  ;;  %v2026_v44 = vadd.f32 %v1988_v50, %v1980_v53  ;;  %v2033_v35 = vadd.f32 %v1989_v22, %v1981_v24 }
 0x244   : > { %v1916_v28 = vsub.f32 1.0, %v1915_v4  ;;  %v1983_v63 = vmul.f32 %v3726_v26, %v1955_v23  ;;  %v2006_v49 = vrot.slane %v2005_v52, 4  ;;  %v2013_v31 = vrot.slane %v2012_v15, 4  ;;  %v2051_v4 = vpop.permute.xlu2 %2050 }
 0x245   : > { %v1925_v59 = vand.u32 2147483648, %v3922_v17  ;;  %v1902_v30 = vadd.f32 1.1283791, %v1901_v25  ;;  %vm1920_vm15 = vweird.f32 %v2332_v13  ;;  %v1923_v34 = vand.u32 2147483647, %v3922_v17 }
 0x246   : > { %v1917_v0 = vmul.f32 %v2332_v13, %v1916_v28  ;;  %v1975_v8 = vmul.f32 %v3484_v29, %v1947_v40  ;;  %v1999_v1 = vrot.slane %v1998_v19, 4  ;;  %v2213_v3 = vclamps-f32 %v1608_v57, 1.0 }
 0x247   : > { %v2020_v21 = vrot.slane %v2019_v9, 4  ;;  %v2027_v12 = vrot.slane %v2026_v44, 4  ;;  %v2034_v60 = vrot.slane %v2033_v35, 4  ;;  %vm1919_vm0 = vweird.f32 %v3922_v17 }
 0x248   : > { %v1918_v45 = vadd.f32 %v2332_v13, %v1917_v0  ;;  %v1991_v27 = vadd.f32 %v1983_v63, %v1975_v8  ;;  %v2007_v6 = vadd.f32 %v2006_v49, %v2005_v52  ;;  %vm1921_vm1 = vmor %vm1919_vm0, %vm1920_vm15  ;;  %v1926_v61 = vor.u32 1.1754944e-38, %v1925_v59 }
 0x249   : > { %v2014_v33 = vadd.f32 %v2013_v31, %v2012_v15  ;;  %v1903_v36 = vmul.f32 %v1902_v30, %v3822_v38  ;;  %vm1924_vm2 = vcmp.eq.f32.partialorder %v1923_v34, 8.507059e+37  ;;  %v2000_v48 = vadd.f32 %v1999_v1, %v1998_v19 }
 0x24a   : > { %v1922_v5 = vsel %vm1921_vm1, %v2332_v13, %v1918_v45  ;;  %v1938_v18 = vadd.f32 1.0, %v2213_v3  ;;  %v2021_v41 = vadd.f32 %v2020_v21, %v2019_v9  ;;  %v2028_v47 = vadd.f32 %v2027_v12, %v2026_v44 }
 0x24b   : > { %v1927_v43 = vsel %vm1924_vm2, %v1926_v61, %v1922_v5  ;;  %v2035_v10 = vadd.f32 %v2034_v60, %v2033_v35  ;;  %v1992_v54 = vrot.slane %v1991_v27, 4  ;;  %v1266_v7 = vmul.f32 0.5, %v3577_v16 }
 0x24c   : > { %v1928_v58 = vmul.f32 %v1927_v43, %v1903_v36  ;;  %v2008_v17 = vrot.slane %v2007_v6, 2  ;;  %v2015_v2 = vrot.slane %v2014_v33, 2  ;;  %v2001_v46 = vrot.slane %v2000_v48, 2 }
 0x24d   : > { %v1954_v39 = vmul.f32 %v1938_v18, %v1266_v7  ;;  %v1274_v14 = vmul.f32 0.5, %v3801_v11  ;;  %v2022_v38 = vrot.slane %v2021_v41, 2  ;;  %v2029_v51 = vrot.slane %v2028_v47, 2 }
 0x24e   : > { %v2221_v56 = vclamps-f32 %v1928_v58, 1.0  ;;  %v2036_v37 = vrot.slane %v2035_v10, 2  ;;  %v1993_v62 = vadd.f32 %v1992_v54, %v1991_v27  ;;  %v2009_v23 = vadd.f32 %v2008_v17, %v2007_v6 }
 0x24f   : > { %v2016_v20 = vadd.f32 %v2015_v2, %v2014_v33  ;;  %v2002_v22 = vadd.f32 %v2001_v46, %v2000_v48  ;;  %v1982_v13 = vmul.f32 %v3484_v29, %v1954_v39  ;;  %v2023_v52 = vadd.f32 %v2022_v38, %v2021_v41 }
 0x250   : > { %v1946_v32 = vadd.f32 1.0, %v2221_v56  ;;  %v2030_v16 = vadd.f32 %v2029_v51, %v2028_v47  ;;  %v2037_v15 = vadd.f32 %v2036_v37, %v2035_v10  ;;  %v1994_v42 = vrot.slane %v1993_v62, 2 }
 0x251   : > { %v2010_v53 = vrot.slane %v2009_v23, 1  ;;  %v2017_v24 = vrot.slane %v2016_v20, 1  ;;  %v2003_v25 = vrot.slane %v2002_v22, 1  ;;  %v2024_v40 = vrot.slane %v2023_v52, 1 }
 0x252   : > { %v1962_v50 = vmul.f32 %v1946_v32, %v1274_v14  ;;  %v2031_v19 = vrot.slane %v2030_v16, 1  ;;  %v2038_v57 = vrot.slane %v2037_v15, 1  ;;  %v1995_v44 = vadd.f32 %v1994_v42, %v1993_v62 }
 0x253   : > { %v2011_v35 = vadd.f32 %v2010_v53, %v2009_v23  ;;  %v2018_v29 = vadd.f32 %v2017_v24, %v2016_v20  ;;  %v2004_v63 = vadd.f32 %v2003_v25, %v2002_v22  ;;  %v2053_v49 = vperm.slane %v2051_v4, 0 }
 0x254   : > { %v1990_v55 = vmul.f32 %v3726_v26, %v1962_v50  ;;  %v2025_v26 = vadd.f32 %v2024_v40, %v2023_v52  ;;  %v2032_v31 = vadd.f32 %v2031_v19, %v2030_v16  ;;  %v2039_v59 = vadd.f32 %v2038_v57, %v2037_v15 }
 0x255   : > { %v1996_v0 = vrot.slane %v1995_v44, 1  ;;  %v2056_v8 = vadd.f32 %v2053_v49, %v2011_v35  ;;  %v2057_v1 = vadd.f32 %v2053_v49, %v2018_v29  ;;  %v2055_v3 = vadd.f32 %v2053_v49, %v2004_v63 }
 0x256   : > { %v2040_v11 = vadd.f32 %v1990_v55, %v1982_v13  ;;  %v2058_v12 = vadd.f32 %v2053_v49, %v2025_v26  ;;  %v2059_v60 = vadd.f32 %v2053_v49, %v2032_v31  ;;  %v2060_v45 = vadd.f32 %v2053_v49, %v2039_v59 }
 0x257   : > { %v1997_v27 = vadd.f32 %v1996_v0, %v1995_v44  ;;  %v2071_v61 = vrot.slane %v2056_v8, 6  ;;  %v2072_v33 = vrot.slane %v2057_v1, 5  ;;  %v2070_v36 = vrot.slane %v2055_v3, 7 }
 0x258   : > { %v2041_v9 = vrot.slane %v2040_v11, 4  ;;  %vm2079_vm8 = vcmask 1042434   ;;  %v2073_v48 = vrot.slane %v2058_v12, 4  ;;  %v2074_v18 = vrot.slane %v2059_v60, 3 }
 0x259   : > { %v2075_v43 = vrot.slane %v2060_v45, 2  ;;  %v2054_v41 = vadd.f32 %v2053_v49, %v1997_v27  ;;  %vm2077_vm3 = vcmask 1040384   ;;  %vm2083_vm4 = vcmask 1044484  }
 0x25a   : > { %v2042_v28 = vadd.f32 %v2041_v9, %v2040_v11  ;;  %vm2085_vm5 = vcmask 1046534   ;;  %v2080_v10 = vsel %vm2079_vm8, %v2071_v61, %v2072_v33  ;;  %vm2081_vm6 = vcmask 1041408  }
 0x25b   : > { %vm2087_vm7 = vcmask 1045508   ;;  %vm2089_vm9 = vcmask 1043456   ;;  %v2078_v58 = vsel %vm2077_vm3, %v2054_v41, %v2070_v36  ;;  %v2084_v54 = vsel %vm2083_vm4, %v2073_v48, %v2074_v18 }
 0x25c   : > { %v2043_v30 = vrot.slane %v2042_v28, 2  ;;  %v2082_v17 = vsel %vm2081_vm6, %v2078_v58, %v2080_v10 }
 0x25e   : > { %v2044_v34 = vadd.f32 %v2043_v30, %v2042_v28 }
 0x260   : > { %v2045_v21 = vrot.slane %v2044_v34, 1 }
 0x262   : > { %v2046_v6 = vadd.f32 %v2045_v21, %v2044_v34 }
 0x264   : > { %v2061_v5 = vadd.f32 %v2053_v49, %v2046_v6 }
 0x266   : > { %v2076_v47 = vrot.slane %v2061_v5, 1 }
 0x268   : > { %v2086_v7 = vsel %vm2085_vm5, %v2075_v43, %v2076_v47 }
 0x269   : > { %v2088_v2 = vsel %vm2087_vm7, %v2084_v54, %v2086_v7 }
 0x26a   : > { %v2090_v56 = vsel %vm2089_vm9, %v2082_v17, %v2088_v2 }
 0x26b   : > { %2092 = vst [vmem:[%s271_s6] sm:$0xff] %v2090_v56 }
 0x26c   : > { %2360 = shalt.err (!%p2357_p3)
}
 0x26d   : > { %2226 = dma.vmem_to_hbm [thread:$0]  (%p2479_p5), %s2107_s15, 128, %s2109_s16, %s2094_s17  }
 0x26e PF: > { %p2232_p4 = scmp.ge.s32.totalorder %s2395_s29, 2  ;;  %s2120_s24 = sand.u32 1, %s2383_s26  }
 0x26f   : > { %s2121_s30 = scalar_lea.sflag [#allocation4], %s2120_s24 }
 0x270   : > { %p2229_p7 = pnand %p2232_p4, %p2483_p6 }
 0x272   : > { %p2230_p8 = pneg %p2229_p7 }
 0x274   : > { %2378 = dma.done.wait (%p2230_p8), %s2121_s30, 128  }
 0x275   : > { %2380 = vsyncadd (%p2230_p8), %s2121_s30, 4294967168  ;;  %p19_p9 = scmp.ge.s32.totalorder %s2466_s8, 4   ;;  %s4078_s26 = smov %s2387_s27 }
 0x276   : > { %s4079_s27 = smov %s2391_s28  ;;  %s4080_s28 = smov %s2477_s11 }
 0x277   : > { %s4081_s29 = smov %s2466_s8  ;;  %21 = sbr.rel (!%p19_p9) target bundleno = 6 (0x6), region = 83 }
 0x27c   :  { %2127 = vsyncpa [#allocation4], 1 }
 0x27d   :  { %2129 = vsyncpa [#allocation4 + $0x1], 1 }

</bundles_post_ra>
